<compile_context>
chip_gen: v5e
topology: v5e:2x2
jax: 0.10.0
libtpu: 0.0.40
codegen_flags: <defaults>
</compile_context>

<pallas_src>
import jax
import jax.numpy as jnp
from jax.experimental import pallas as pl
from jax.experimental.pallas import tpu as pltpu

EPS = 1e-5
MXU_DTYPE = jnp.bfloat16       # MXU operand dtype
STREAM_DTYPE = jnp.bfloat16    # dtype of the streamed intermediates y1/y2
VMEM_LIMIT_BYTES = 32 * 1024 * 1024   # safe on v5e/v6e (128M) and v7x (64M)

# Measured pipelined fraction of HBM roofline per tile width (see review).
_TILE_EFF = {128: 0.29, 256: 0.63, 512: 0.85, 1024: 0.86, 2048: 0.86}
_MAX_TILE_N = 2048


def _round_up(x, m):
    return (x + m - 1) // m * m


def _pick_tile_n(n):
    """Pick (n_pad, tile_n): lane-dense tiles, biased towards wide tiles.

    Small N: a single lane-dense tile.  Large N: choose the tile width that
    maximizes  efficiency(tile) * N / round_up(N, tile)  so awkward N (e.g.
    1920 or 2500) no longer collapse to 128/256-wide tiles.
    """
    n = max(int(n), 1)
    n128 = _round_up(n, 128)
    if n128 <= _MAX_TILE_N:
        return n128, n128
    best = None
    for tile in (2048, 1024, 512, 256):       # largest first -> wins ties
        n_pad = _round_up(n, tile)
        score = _TILE_EFF[tile] * n / n_pad
        if best is None or score > best[0] + 1e-9:
            best = (score, n_pad, tile)
    return best[1], best[2]


# -----------------------------------------------------------------------------
# Kernels
# -----------------------------------------------------------------------------
def _lane_group_sums(y, acc_s, acc_q, chunks):
    """VALU accumulation of sum / sum-of-squares over 128-lane groups."""
    for k in range(chunks):
        yk = y[:, k * 128:(k + 1) * 128]
        acc_s = acc_s + yk
        acc_q = acc_q + yk * yk
    return acc_s, acc_q


def _make_conv_stats_kernel(tile_n):
    """Layer 1: y = W @ x_tile (bf16 store); lane-dense sum / sumsq scratch."""
    chunks = tile_n // 128

    def kernel(x_ref, w_ref, y_ref, sum_ref, sq_ref, s_acc, q_acc):
        nt = pl.program_id(1)

        @pl.when(nt == 0)
        def _():
            s_acc[...] = jnp.zeros_like(s_acc)
            q_acc[...] = jnp.zeros_like(q_acc)

        x = x_ref[0].astype(MXU_DTYPE)                                # (Cin8, TN)
        y = jnp.dot(w_ref[...], x, preferred_element_type=jnp.float32)  # (Cout, TN) f32
        y_ref[0] = y.astype(y_ref.dtype)                              # bf16 store

        # Zero-padded point columns (and zero-padded input channels) give
        # exactly 0 here, so the statistics need no masking.
        acc_s, acc_q = _lane_group_sums(y, s_acc[...], q_acc[...], chunks)
        s_acc[...] = acc_s
        q_acc[...] = acc_q

        @pl.when(nt == pl.num_programs(1) - 1)
        def _():
            sum_ref[0] = jnp.sum(s_acc[...], axis=1, keepdims=True)
            sq_ref[0] = jnp.sum(q_acc[...], axis=1, keepdims=True)

    return kernel


def _make_norm_conv_stats_kernel(tile_n, n_valid, needs_mask):
    """Layer 2: h = relu(y1*scale + shift) (masked on h); y = W @ h; stats."""
    chunks = tile_n // 128

    def kernel(yp_ref, scale_ref, shift_ref, w_ref, y_ref, sum_ref, sq_ref,
               s_acc, q_acc):
        nt = pl.program_id(1)

        @pl.when(nt == 0)
        def _():
            s_acc[...] = jnp.zeros_like(s_acc)
            q_acc[...] = jnp.zeros_like(q_acc)

        # Fused (bias + BN + relu) epilogue of the previous layer: one FMA.
        h = jnp.maximum(
            yp_ref[0].astype(jnp.float32) * scale_ref[...] + shift_ref[...], 0.0)
        if needs_mask:
            # Mask the (small) matmul input instead of the (large) output:
            # padded columns of y become exactly 0, so stats need no mask.
            col = nt * tile_n + jax.lax.broadcasted_iota(jnp.int32, (1, tile_n), 1)
            h = jnp.where(col < n_valid, h, 0.0)

        y = jnp.dot(w_ref[...], h.astype(MXU_DTYPE),
                    preferred_element_type=jnp.float32)               # (Cout, TN)
        y_ref[0] = y.astype(y_ref.dtype)                              # bf16 store

        acc_s, acc_q = _lane_group_sums(y, s_acc[...], q_acc[...], chunks)
        s_acc[...] = acc_s
        q_acc[...] = acc_q

        @pl.when(nt == pl.num_programs(1) - 1)
        def _():
            sum_ref[0] = jnp.sum(s_acc[...], axis=1, keepdims=True)
            sq_ref[0] = jnp.sum(q_acc[...], axis=1, keepdims=True)

    return kernel


def _make_norm_conv_pool_kernel(tile_n, n_valid, needs_mask):
    """Layer 3 + pooling: h = relu(y2*scale+shift); y = W @ h; accumulate
    per-channel sum / sumsq / max / min of the raw y.  y3 is never emitted."""
    chunks = tile_n // 128

    def kernel(yp_ref, scale_ref, shift_ref, w_ref,
               sum_ref, sq_ref, mx_ref, mn_ref,
               s_acc, q_acc, mx_acc, mn_acc):
        nt = pl.program_id(1)
        last = pl.num_programs(1) - 1

        @pl.when(nt == 0)
        def _():
            s_acc[...] = jnp.zeros_like(s_acc)
            q_acc[...] = jnp.zeros_like(q_acc)
            mx_acc[...] = jnp.full_like(mx_acc, -jnp.inf)
            mn_acc[...] = jnp.full_like(mn_acc, jnp.inf)

        h = jnp.maximum(
            yp_ref[0].astype(jnp.float32) * scale_ref[...] + shift_ref[...], 0.0)
        if needs_mask:
            col = nt * tile_n + jax.lax.broadcasted_iota(jnp.int32, (1, tile_n), 1)
            valid = col < n_valid                     # (1, TN)
            h = jnp.where(valid, h, 0.0)

        y = jnp.dot(w_ref[...], h.astype(MXU_DTYPE),
                    preferred_element_type=jnp.float32)               # (Cout, TN)

        # Padded columns of y are exactly 0 (masked h) -> no mask for sums.
        acc_s, acc_q = _lane_group_sums(y, s_acc[...], q_acc[...], chunks)
        s_acc[...] = acc_s
        q_acc[...] = acc_q

        def minmax_update(mask_cols):
            acc_mx = mx_acc[...]
            acc_mn = mn_acc[...]
            for k in range(chunks):
                yk = y[:, k * 128:(k + 1) * 128]
                if mask_cols is not None:
                    mk = mask_cols[:, k * 128:(k + 1) * 128]
                    acc_mx = jnp.maximum(acc_mx, jnp.where(mk, yk, -jnp.inf))
                    acc_mn = jnp.minimum(acc_mn, jnp.where(mk, yk, jnp.inf))
                else:
                    acc_mx = jnp.maximum(acc_mx, yk)
                    acc_mn = jnp.minimum(acc_mn, yk)
            mx_acc[...] = acc_mx
            mn_acc[...] = acc_mn

        if needs_mask:
            # Only the last tile has padded columns; exclude them from max/min
            # without paying the select on every tile.
            is_last = nt == last

            @pl.when(is_last)
            def _():
                minmax_update(valid)

            @pl.when(jnp.logical_not(is_last))
            def _():
                minmax_update(None)
        else:
            minmax_update(None)

        @pl.when(nt == last)
        def _():
            sum_ref[0] = jnp.sum(s_acc[...], axis=1, keepdims=True)
            sq_ref[0] = jnp.sum(q_acc[...], axis=1, keepdims=True)
            mx_ref[0] = jnp.max(mx_acc[...], axis=1, keepdims=True)
            mn_ref[0] = jnp.min(mn_acc[...], axis=1, keepdims=True)

    return kernel


def _head_kernel(g_ref, wf1_ref, bf1_ref, g4_ref, be4_ref,
                 wf2_ref, bf2_ref, g5_ref, be5_ref, out_ref):
    """fc1/bn4/relu + fc2/bn5/relu; BN statistics over the batch dim (tiny)."""
    def fc_bn_relu(h, w, b, gamma, beta):
        y = jnp.dot(h, w, preferred_element_type=jnp.float32) + b
        mean = jnp.mean(y, axis=0, keepdims=True)
        var = jnp.maximum(jnp.mean(y * y, axis=0, keepdims=True) - mean * mean, 0.0)
        yhat = (y - mean) * jax.lax.rsqrt(var + EPS)
        return jnp.maximum(yhat * gamma + beta, 0.0)

    z = fc_bn_relu(g_ref[...], wf1_ref[...], bf1_ref[...], g4_ref[...], be4_ref[...])
    z = fc_bn_relu(z, wf2_ref[...], bf2_ref[...], g5_ref[...], be5_ref[...])
    out_ref[...] = z.astype(out_ref.dtype)


# -----------------------------------------------------------------------------
# pallas_call wrappers
# -----------------------------------------------------------------------------
def _grid_params():
    return pltpu.CompilerParams(
        dimension_semantics=("parallel", "arbitrary"),
        vmem_limit_bytes=VMEM_LIMIT_BYTES)


def _conv_stats_call(x, w, tile_n):
    B, c_in, n_pad = x.shape
    c_out = w.shape[0]
    nt = n_pad // tile_n
    kernel = _make_conv_stats_kernel(tile_n)
    return pl.pallas_call(
        kernel,
        grid=(B, nt),
        in_specs=[
            pl.BlockSpec((1, c_in, tile_n), lambda b, t: (b, 0, t)),
            pl.BlockSpec((c_out, c_in), lambda b, t: (0, 0)),
        ],
        out_specs=[
            pl.BlockSpec((1, c_out, tile_n), lambda b, t: (b, 0, t)),
            pl.BlockSpec((1, c_out, 1), lambda b, t: (b, 0, 0)),
            pl.BlockSpec((1, c_out, 1), lambda b, t: (b, 0, 0)),
        ],
        out_shape=[
            jax.ShapeDtypeStruct((B, c_out, n_pad), STREAM_DTYPE),
            jax.ShapeDtypeStruct((B, c_out, 1), jnp.float32),
            jax.ShapeDtypeStruct((B, c_out, 1), jnp.float32),
        ],
        scratch_shapes=[pltpu.VMEM((c_out, 128), jnp.float32),
                        pltpu.VMEM((c_out, 128), jnp.float32)],
        compiler_params=_grid_params(),
    )(x, w)


def _norm_conv_stats_call(yp, scale, shift, w, tile_n, n_valid, needs_mask):
    B, c_in, n_pad = yp.shape
    c_out = w.shape[0]
    nt = n_pad // tile_n
    kernel = _make_norm_conv_stats_kernel(tile_n, n_valid, needs_mask)
    return pl.pallas_call(
        kernel,
        grid=(B, nt),
        in_specs=[
            pl.BlockSpec((1, c_in, tile_n), lambda b, t: (b, 0, t)),
            pl.BlockSpec((c_in, 1), lambda b, t: (0, 0)),
            pl.BlockSpec((c_in, 1), lambda b, t: (0, 0)),
            pl.BlockSpec((c_out, c_in), lambda b, t: (0, 0)),
        ],
        out_specs=[
            pl.BlockSpec((1, c_out, tile_n), lambda b, t: (b, 0, t)),
            pl.BlockSpec((1, c_out, 1), lambda b, t: (b, 0, 0)),
            pl.BlockSpec((1, c_out, 1), lambda b, t: (b, 0, 0)),
        ],
        out_shape=[
            jax.ShapeDtypeStruct((B, c_out, n_pad), STREAM_DTYPE),
            jax.ShapeDtypeStruct((B, c_out, 1), jnp.float32),
            jax.ShapeDtypeStruct((B, c_out, 1), jnp.float32),
        ],
        scratch_shapes=[pltpu.VMEM((c_out, 128), jnp.float32),
                        pltpu.VMEM((c_out, 128), jnp.float32)],
        compiler_params=_grid_params(),
    )(yp, scale, shift, w)


def _norm_conv_pool_call(yp, scale, shift, w, tile_n, n_valid, needs_mask):
    B, c_in, n_pad = yp.shape
    c_out = w.shape[0]
    nt = n_pad // tile_n
    kernel = _make_norm_conv_pool_kernel(tile_n, n_valid, needs_mask)
    stat = jax.ShapeDtypeStruct((B, c_out, 1), jnp.float32)
    stat_spec = pl.BlockSpec((1, c_out, 1), lambda b, t: (b, 0, 0))
    return pl.pallas_call(
        kernel,
        grid=(B, nt),
        in_specs=[
            pl.BlockSpec((1, c_in, tile_n), lambda b, t: (b, 0, t)),
            pl.BlockSpec((c_in, 1), lambda b, t: (0, 0)),
            pl.BlockSpec((c_in, 1), lambda b, t: (0, 0)),
            pl.BlockSpec((c_out, c_in), lambda b, t: (0, 0)),
        ],
        out_specs=[stat_spec, stat_spec, stat_spec, stat_spec],
        out_shape=[stat, stat, stat, stat],
        scratch_shapes=[pltpu.VMEM((c_out, 128), jnp.float32)] * 4,
        compiler_params=_grid_params(),
    )(yp, scale, shift, w)


def _head_call(gfeat, params):
    B, L = gfeat.shape
    inputs = [gfeat, params['wf1'], params['bf1'], params['g4'], params['be4'],
              params['wf2'], params['bf2'], params['g5'], params['be5']]
    return pl.pallas_call(
        _head_kernel,
        out_shape=jax.ShapeDtypeStruct((B, L), jnp.float32),
        in_specs=[pl.BlockSpec(memory_space=pltpu.MemorySpace.VMEM)] * len(inputs),
        out_specs=pl.BlockSpec(memory_space=pltpu.MemorySpace.VMEM),
        compiler_params=pltpu.CompilerParams(vmem_limit_bytes=VMEM_LIMIT_BYTES),
    )(*inputs)


# -----------------------------------------------------------------------------
# BN folding (tiny XLA glue between streamed passes)
# -----------------------------------------------------------------------------
def _fold_bn(psum, psq, gamma, beta, count):
    """Fold training-mode BN (+ the conv bias, which cancels exactly) into one
    per-channel scale/shift.  psum/psq: (B, C, 1) partial sums of y and y*y
    where y = W @ x with NO bias; BN of (y + b) equals BN of y."""
    mean_y = jnp.sum(psum, axis=0) / count                   # (C, 1)
    ex2 = jnp.sum(psq, axis=0) / count
    var = jnp.maximum(ex2 - mean_y * mean_y, 0.0)            # biased variance
    scale = gamma * jax.lax.rsqrt(var + EPS)
    shift = beta - mean_y * scale
    return scale, shift


# -----------------------------------------------------------------------------
# Parameters & forward
# -----------------------------------------------------------------------------
def init_params(key, input_dim, latent_dim):
    """Shapes / init mirroring torch defaults.  Conv1d weight (out, in, 1) is
    stored as (out, in); Linear weight (out, in) is stored pre-transposed as
    (in, out).  BN: gamma=1, beta=0.  Conv biases are kept for fidelity but
    cancel exactly under training-mode BatchNorm."""
    conv = [('1', 64, input_dim), ('2', 128, 64), ('3', latent_dim, 128)]
    fc = [('f1', latent_dim, latent_dim), ('f2', latent_dim, latent_dim)]
    keys = iter(jax.random.split(key, 2 * (len(conv) + len(fc))))
    params = {}
    for nm, cout, cin in conv:
        bound = 1.0 / float(cin) ** 0.5
        params['w' + nm] = jax.random.uniform(next(keys), (cout, cin),
                                              jnp.float32, -bound, bound)
        params['b' + nm] = jax.random.uniform(next(keys), (cout, 1),
                                              jnp.float32, -bound, bound)
    for nm, cin, cout in fc:
        bound = 1.0 / float(cin) ** 0.5
        params['w' + nm] = jax.random.uniform(next(keys), (cin, cout),
                                              jnp.float32, -bound, bound)
        params['b' + nm] = jax.random.uniform(next(keys), (1, cout),
                                              jnp.float32, -bound, bound)
    for nm, c in zip(('1', '2', '3'), (64, 128, latent_dim)):
        params['g' + nm] = jnp.ones((c, 1), jnp.float32)
        params['be' + nm] = jnp.zeros((c, 1), jnp.float32)
    for nm in ('4', '5'):
        params['g' + nm] = jnp.ones((1, latent_dim), jnp.float32)
        params['be' + nm] = jnp.zeros((1, latent_dim), jnp.float32)
    return params


def pointnet_forward(x, params):
    """x: (B, input_dim, N) as in the torch module. Returns (B, latent_dim)."""
    x = x.astype(jnp.float32)
    B, c_in, n = x.shape
    n_pad, tile_n = _pick_tile_n(n)
    needs_mask = (n_pad != n)
    cin_pad = _round_up(c_in, 8)               # sublane-friendly conv1 input
    x = jnp.pad(x, ((0, 0), (0, cin_pad - c_in), (0, n_pad - n)))
    count = B * n

    w1 = jnp.pad(params['w1'], ((0, 0), (0, cin_pad - c_in))).astype(MXU_DTYPE)
    w2 = params['w2'].astype(MXU_DTYPE)
    w3 = params['w3'].astype(MXU_DTYPE)

    # conv1 (+ bn1 statistics), streamed over point tiles; y1 stored bf16.
    y1, s1, q1 = _conv_stats_call(x, w1, tile_n)
    sc1, sh1 = _fold_bn(s1, q1, params['g1'], params['be1'], count)
    # bn1+relu fused into conv2 (+ bn2 statistics); y2 stored bf16.
    y2, s2, q2 = _norm_conv_stats_call(y1, sc1, sh1, w2, tile_n, n, needs_mask)
    sc2, sh2 = _fold_bn(s2, q2, params['g2'], params['be2'], count)
    # bn2+relu fused into conv3; bn3 stats AND the point-wise max/min of the
    # raw conv3 output are accumulated in-kernel -> y3 never touches HBM.
    s3, q3, mx3, mn3 = _norm_conv_pool_call(y2, sc2, sh2, w3, tile_n, n, needs_mask)
    sc3, sh3 = _fold_bn(s3, q3, params['g3'], params['be3'], count)

    # max over points of relu(scale3*y + shift3): monotone in y for scale3>0,
    # anti-monotone for scale3<0 -> pick per-channel max or min accordingly.
    m = jnp.where(sc3[None] >= 0.0, mx3, mn3)                        # (B, L, 1)
    gfeat = jnp.maximum(m * sc3[None] + sh3[None], 0.0)[:, :, 0]     # (B, L)

    # fc1/bn4/relu + fc2/bn5/relu (BN over the batch dimension)
    return _head_call(gfeat, params)


if __name__ == "__main__":
    B, N = 2, 16
    input_dim, latent_dim = 4, 32

    key = jax.random.PRNGKey(0)
    kx, kp = jax.random.split(key)
    x = jax.random.normal(kx, (B, input_dim, N), dtype=jnp.float32)
    params = init_params(kp, input_dim, latent_dim)

    fwd = jax.jit(pointnet_forward)
    out = jax.block_until_ready(fwd(x, params))
    assert out.shape == (B, latent_dim), out.shape
    assert bool(jnp.all(jnp.isfinite(out)))
    print("KERNEL_OK")
</pallas_src>

<mosaic_0001>
module attributes {stable_mosaic.version = 11 : i64} {
  func.func @kernel(%arg0: i32, %arg1: i32, %arg2: memref<1x8x128xf32, #tpu.memory_space<vmem>>, %arg3: memref<64x8xbf16, #tpu.memory_space<vmem>>, %arg4: memref<1x64x128xbf16, #tpu.memory_space<vmem>>, %arg5: memref<1x64x1xf32, #tpu.memory_space<vmem>>, %arg6: memref<1x64x1xf32, #tpu.memory_space<vmem>>, %arg7: memref<64x128xf32, #tpu.memory_space<vmem>>, %arg8: memref<64x128xf32, #tpu.memory_space<vmem>>) attributes {dimension_semantics = [#tpu.dimension_semantics<parallel>, #tpu.dimension_semantics<arbitrary>], iteration_bounds = array<i64: 2, 1>, scalar_prefetch = 0 : i64, scratch_operands = 2 : i64, tpu.core_type = #tpu.core_type<tc>, window_params = [{transform_indices = @transform_0, window_bounds = array<i64: 1, 8, 128>}, {pipeline_mode = #tpu.pipeline_mode<synchronous>, transform_indices = @transform_1, window_bounds = array<i64: 64, 8>}, {transform_indices = @transform_2, window_bounds = array<i64: 1, 64, 128>}, {transform_indices = @transform_3, window_bounds = array<i64: 1, 64, 1>}, {transform_indices = @transform_4, window_bounds = array<i64: 1, 64, 1>}]} {
    %c0_i32 = arith.constant 0 : i32
    %0 = arith.cmpi eq, %arg1, %c0_i32 : i32
    %1 = arith.extui %0 : i1 to i32
    %c0_i32_0 = arith.constant 0 : i32
    %2 = arith.cmpi ne, %1, %c0_i32_0 : i32
    scf.if %2 {
      %cst_18 = arith.constant 0.000000e+00 : f32
      %22 = vector.broadcast %cst_18 : f32 to vector<64x128xf32>
      %c0_19 = arith.constant 0 : index
      %c0_20 = arith.constant 0 : index
      %23 = vector.load %arg7[%c0_19, %c0_20] : memref<64x128xf32, #tpu.memory_space<vmem>>, vector<64x128xf32>
      tpu.vector_store %arg7[%c0_19, %c0_20], %22 {strides = array<i32>} : memref<64x128xf32, #tpu.memory_space<vmem>>, vector<64x128xf32>,
      %cst_21 = arith.constant 0.000000e+00 : f32
      %24 = vector.broadcast %cst_21 : f32 to vector<64x128xf32>
      %c0_22 = arith.constant 0 : index
      %c0_23 = arith.constant 0 : index
      %25 = vector.load %arg8[%c0_22, %c0_23] : memref<64x128xf32, #tpu.memory_space<vmem>>, vector<64x128xf32>
      tpu.vector_store %arg8[%c0_22, %c0_23], %24 {strides = array<i32>} : memref<64x128xf32, #tpu.memory_space<vmem>>, vector<64x128xf32>,
    } else {
    }
    %c0 = arith.constant 0 : index
    %c0_1 = arith.constant 0 : index
    %c0_2 = arith.constant 0 : index
    %3 = vector.load %arg2[%c0, %c0_1, %c0_2] : memref<1x8x128xf32, #tpu.memory_space<vmem>>, vector<1x8x128xf32>
    %4 = vector.shape_cast %3 : vector<1x8x128xf32> to vector<8x128xf32>
    %5 = arith.truncf %4 : vector<8x128xf32> to vector<8x128xbf16>
    %c0_3 = arith.constant 0 : index
    %c0_4 = arith.constant 0 : index
    %6 = vector.load %arg3[%c0_3, %c0_4] : memref<64x8xbf16, #tpu.memory_space<vmem>>, vector<64x8xbf16>
    %cst = arith.constant dense<0.000000e+00> : vector<64x128xf32>
    %7 = tpu.matmul %6, %5, %cst {dimension_numbers = #tpu.dot_dimension_numbers<[1], [0], [0], [1], [0, 0, 1, 1], [], []>} : vector<64x8xbf16>, vector<8x128xbf16>, vector<64x128xf32> -> vector<64x128xf32>
    %8 = arith.truncf %7 : vector<64x128xf32> to vector<64x128xbf16>
    %c0_5 = arith.constant 0 : index
    %c0_6 = arith.constant 0 : index
    %c0_7 = arith.constant 0 : index
    %9 = vector.load %arg4[%c0_5, %c0_6, %c0_7] : memref<1x64x128xbf16, #tpu.memory_space<vmem>>, vector<1x64x128xbf16>
    %10 = vector.shape_cast %9 : vector<1x64x128xbf16> to vector<64x128xbf16>
    %11 = vector.shape_cast %8 : vector<64x128xbf16> to vector<1x64x128xbf16>
    tpu.vector_store %arg4[%c0_5, %c0_6, %c0_7], %11 {strides = array<i32>} : memref<1x64x128xbf16, #tpu.memory_space<vmem>>, vector<1x64x128xbf16>,
    %c0_8 = arith.constant 0 : index
    %c0_9 = arith.constant 0 : index
    %12 = vector.load %arg7[%c0_8, %c0_9] : memref<64x128xf32, #tpu.memory_space<vmem>>, vector<64x128xf32>
    %c0_10 = arith.constant 0 : index
    %c0_11 = arith.constant 0 : index
    %13 = vector.load %arg8[%c0_10, %c0_11] : memref<64x128xf32, #tpu.memory_space<vmem>>, vector<64x128xf32>
    %14 = arith.addf %12, %7 : vector<64x128xf32>
    %15 = arith.mulf %7, %7 : vector<64x128xf32>
    %16 = arith.addf %13, %15 : vector<64x128xf32>
    %c0_12 = arith.constant 0 : index
    %c0_13 = arith.constant 0 : index
    %17 = vector.load %arg7[%c0_12, %c0_13] : memref<64x128xf32, #tpu.memory_space<vmem>>, vector<64x128xf32>
    tpu.vector_store %arg7[%c0_12, %c0_13], %14 {strides = array<i32>} : memref<64x128xf32, #tpu.memory_space<vmem>>, vector<64x128xf32>,
    %c0_14 = arith.constant 0 : index
    %c0_15 = arith.constant 0 : index
    %18 = vector.load %arg8[%c0_14, %c0_15] : memref<64x128xf32, #tpu.memory_space<vmem>>, vector<64x128xf32>
    tpu.vector_store %arg8[%c0_14, %c0_15], %16 {strides = array<i32>} : memref<64x128xf32, #tpu.memory_space<vmem>>, vector<64x128xf32>,
    %c0_i32_16 = arith.constant 0 : i32
    %19 = arith.cmpi eq, %arg1, %c0_i32_16 : i32
    %20 = arith.extui %19 : i1 to i32
    %c0_i32_17 = arith.constant 0 : i32
    %21 = arith.cmpi ne, %20, %c0_i32_17 : i32
    scf.if %21 {
      %c0_18 = arith.constant 0 : index
      %c0_19 = arith.constant 0 : index
      %22 = vector.load %arg7[%c0_18, %c0_19] : memref<64x128xf32, #tpu.memory_space<vmem>>, vector<64x128xf32>
      %cst_20 = arith.constant dense<0.000000e+00> : vector<64xf32>
      %23 = vector.multi_reduction <add>, %22, %cst_20 [1] : vector<64x128xf32> to vector<64xf32>
      %24 = vector.shape_cast %23 : vector<64xf32> to vector<64x1xf32>
      %c0_21 = arith.constant 0 : index
      %c0_22 = arith.constant 0 : index
      %c0_23 = arith.constant 0 : index
      %25 = vector.load %arg5[%c0_21, %c0_22, %c0_23] : memref<1x64x1xf32, #tpu.memory_space<vmem>>, vector<1x64x1xf32>
      %26 = vector.shape_cast %25 : vector<1x64x1xf32> to vector<64x1xf32>
      %27 = vector.shape_cast %24 : vector<64x1xf32> to vector<1x64x1xf32>
      tpu.vector_store %arg5[%c0_21, %c0_22, %c0_23], %27 {strides = array<i32>} : memref<1x64x1xf32, #tpu.memory_space<vmem>>, vector<1x64x1xf32>,
      %c0_24 = arith.constant 0 : index
      %c0_25 = arith.constant 0 : index
      %28 = vector.load %arg8[%c0_24, %c0_25] : memref<64x128xf32, #tpu.memory_space<vmem>>, vector<64x128xf32>
      %cst_26 = arith.constant dense<0.000000e+00> : vector<64xf32>
      %29 = vector.multi_reduction <add>, %28, %cst_26 [1] : vector<64x128xf32> to vector<64xf32>
      %30 = vector.shape_cast %29 : vector<64xf32> to vector<64x1xf32>
      %c0_27 = arith.constant 0 : index
      %c0_28 = arith.constant 0 : index
      %c0_29 = arith.constant 0 : index
      %31 = vector.load %arg6[%c0_27, %c0_28, %c0_29] : memref<1x64x1xf32, #tpu.memory_space<vmem>>, vector<1x64x1xf32>
      %32 = vector.shape_cast %31 : vector<1x64x1xf32> to vector<64x1xf32>
      %33 = vector.shape_cast %30 : vector<64x1xf32> to vector<1x64x1xf32>
      tpu.vector_store %arg6[%c0_27, %c0_28, %c0_29], %33 {strides = array<i32>} : memref<1x64x1xf32, #tpu.memory_space<vmem>>, vector<1x64x1xf32>,
    } else {
    }
    return
  }
  func.func @transform_0(%arg0: i32, %arg1: i32) -> (i32, i32, i32) {
    %c0_i32 = arith.constant 0 : i32
    %c0_i32_0 = arith.constant 0 : i32
    return %arg0, %c0_i32, %arg1 : i32, i32, i32
  }
  func.func @transform_1(%arg0: i32, %arg1: i32) -> (i32, i32) {
    %c0_i32 = arith.constant 0 : i32
    %c0_i32_0 = arith.constant 0 : i32
    %c0_i32_1 = arith.constant 0 : i32
    return %c0_i32, %c0_i32_0 : i32, i32
  }
  func.func @transform_2(%arg0: i32, %arg1: i32) -> (i32, i32, i32) {
    %c0_i32 = arith.constant 0 : i32
    %c0_i32_0 = arith.constant 0 : i32
    return %arg0, %c0_i32, %arg1 : i32, i32, i32
  }
  func.func @transform_3(%arg0: i32, %arg1: i32) -> (i32, i32, i32) {
    %c0_i32 = arith.constant 0 : i32
    %c0_i32_0 = arith.constant 0 : i32
    %c0_i32_1 = arith.constant 0 : i32
    return %arg0, %c0_i32, %c0_i32_0 : i32, i32, i32
  }
  func.func @transform_4(%arg0: i32, %arg1: i32) -> (i32, i32, i32) {
    %c0_i32 = arith.constant 0 : i32
    %c0_i32_0 = arith.constant 0 : i32
    %c0_i32_1 = arith.constant 0 : i32
    return %arg0, %c0_i32, %c0_i32_0 : i32, i32, i32
  }
}

module attributes {stable_mosaic.version = 11 : i64} {
  func.func @kernel(%arg0: i32, %arg1: i32, %arg2: memref<1x64x128xbf16, #tpu.memory_space<vmem>>, %arg3: memref<64x1xf32, #tpu.memory_space<vmem>>, %arg4: memref<64x1xf32, #tpu.memory_space<vmem>>, %arg5: memref<128x64xbf16, #tpu.memory_space<vmem>>, %arg6: memref<1x128x128xbf16, #tpu.memory_space<vmem>>, %arg7: memref<1x128x1xf32, #tpu.memory_space<vmem>>, %arg8: memref<1x128x1xf32, #tpu.memory_space<vmem>>, %arg9: memref<128x128xf32, #tpu.memory_space<vmem>>, %arg10: memref<128x128xf32, #tpu.memory_space<vmem>>) attributes {dimension_semantics = [#tpu.dimension_semantics<parallel>, #tpu.dimension_semantics<arbitrary>], iteration_bounds = array<i64: 2, 1>, scalar_prefetch = 0 : i64, scratch_operands = 2 : i64, tpu.core_type = #tpu.core_type<tc>, window_params = [{transform_indices = @transform_0, window_bounds = array<i64: 1, 64, 128>}, {pipeline_mode = #tpu.pipeline_mode<synchronous>, transform_indices = @transform_1, window_bounds = array<i64: 64, 1>}, {pipeline_mode = #tpu.pipeline_mode<synchronous>, transform_indices = @transform_2, window_bounds = array<i64: 64, 1>}, {pipeline_mode = #tpu.pipeline_mode<synchronous>, transform_indices = @transform_3, window_bounds = array<i64: 128, 64>}, {transform_indices = @transform_4, window_bounds = array<i64: 1, 128, 128>}, {transform_indices = @transform_5, window_bounds = array<i64: 1, 128, 1>}, {transform_indices = @transform_6, window_bounds = array<i64: 1, 128, 1>}]} {
    %c0_i32 = arith.constant 0 : i32
    %0 = arith.cmpi eq, %arg1, %c0_i32 : i32
    %1 = arith.extui %0 : i1 to i32
    %c0_i32_0 = arith.constant 0 : i32
    %2 = arith.cmpi ne, %1, %c0_i32_0 : i32
    scf.if %2 {
      %cst_24 = arith.constant 0.000000e+00 : f32
      %41 = vector.broadcast %cst_24 : f32 to vector<128x128xf32>
      %c0_25 = arith.constant 0 : index
      %c0_26 = arith.constant 0 : index
      %42 = vector.load %arg9[%c0_25, %c0_26] : memref<128x128xf32, #tpu.memory_space<vmem>>, vector<128x128xf32>
      tpu.vector_store %arg9[%c0_25, %c0_26], %41 {strides = array<i32>} : memref<128x128xf32, #tpu.memory_space<vmem>>, vector<128x128xf32>,
      %cst_27 = arith.constant 0.000000e+00 : f32
      %43 = vector.broadcast %cst_27 : f32 to vector<128x128xf32>
      %c0_28 = arith.constant 0 : index
      %c0_29 = arith.constant 0 : index
      %44 = vector.load %arg10[%c0_28, %c0_29] : memref<128x128xf32, #tpu.memory_space<vmem>>, vector<128x128xf32>
      tpu.vector_store %arg10[%c0_28, %c0_29], %43 {strides = array<i32>} : memref<128x128xf32, #tpu.memory_space<vmem>>, vector<128x128xf32>,
    } else {
    }
    %c0 = arith.constant 0 : index
    %c0_1 = arith.constant 0 : index
    %c0_2 = arith.constant 0 : index
    %3 = vector.load %arg2[%c0, %c0_1, %c0_2] : memref<1x64x128xbf16, #tpu.memory_space<vmem>>, vector<1x64x128xbf16>
    %4 = vector.shape_cast %3 : vector<1x64x128xbf16> to vector<64x128xbf16>
    %5 = arith.extf %4 : vector<64x128xbf16> to vector<64x128xf32>
    %c0_3 = arith.constant 0 : index
    %c0_4 = arith.constant 0 : index
    %6 = vector.load %arg3[%c0_3, %c0_4] : memref<64x1xf32, #tpu.memory_space<vmem>>, vector<64x1xf32>
    %7 = vector.broadcast %6 : vector<64x1xf32> to vector<64x128xf32>
    %8 = arith.mulf %5, %7 : vector<64x128xf32>
    %c0_5 = arith.constant 0 : index
    %c0_6 = arith.constant 0 : index
    %9 = vector.load %arg4[%c0_5, %c0_6] : memref<64x1xf32, #tpu.memory_space<vmem>>, vector<64x1xf32>
    %10 = vector.broadcast %9 : vector<64x1xf32> to vector<64x128xf32>
    %11 = arith.addf %8, %10 : vector<64x128xf32>
    %cst = arith.constant 0.000000e+00 : f32
    %12 = vector.broadcast %cst : f32 to vector<64x128xf32>
    %13 = arith.maximumf %11, %12 : vector<64x128xf32>
    %c128_i32 = arith.constant 128 : i32
    %14 = arith.muli %arg1, %c128_i32 : i32
    %15 = tpu.iota {dimensions = array<i32: 1>} : vector<1x128xi32>
    %16 = vector.broadcast %14 : i32 to vector<1x128xi32>
    %17 = arith.addi %16, %15 : vector<1x128xi32>
    %c16_i32 = arith.constant 16 : i32
    %18 = vector.broadcast %c16_i32 : i32 to vector<1x128xi32>
    %19 = arith.cmpi slt, %17, %18 : vector<1x128xi32>
    %cst_7 = arith.constant 0.000000e+00 : f32
    %20 = vector.shape_cast %19 : vector<1x128xi1> to vector<1x128xi1>
    %21 = vector.broadcast %20 : vector<1x128xi1> to vector<64x128xi1>
    %22 = vector.broadcast %cst_7 : f32 to vector<64x128xf32>
    %23 = arith.select %21, %13, %22 : vector<64x128xi1>, vector<64x128xf32>
    %c0_8 = arith.constant 0 : index
    %c0_9 = arith.constant 0 : index
    %24 = vector.load %arg5[%c0_8, %c0_9] : memref<128x64xbf16, #tpu.memory_space<vmem>>, vector<128x64xbf16>
    %25 = arith.truncf %23 : vector<64x128xf32> to vector<64x128xbf16>
    %cst_10 = arith.constant dense<0.000000e+00> : vector<128x128xf32>
    %26 = tpu.matmul %24, %25, %cst_10 {dimension_numbers = #tpu.dot_dimension_numbers<[1], [0], [0], [1], [0, 0, 1, 1], [], []>} : vector<128x64xbf16>, vector<64x128xbf16>, vector<128x128xf32> -> vector<128x128xf32>
    %27 = arith.truncf %26 : vector<128x128xf32> to vector<128x128xbf16>
    %c0_11 = arith.constant 0 : index
    %c0_12 = arith.constant 0 : index
    %c0_13 = arith.constant 0 : index
    %28 = vector.load %arg6[%c0_11, %c0_12, %c0_13] : memref<1x128x128xbf16, #tpu.memory_space<vmem>>, vector<1x128x128xbf16>
    %29 = vector.shape_cast %28 : vector<1x128x128xbf16> to vector<128x128xbf16>
    %30 = vector.shape_cast %27 : vector<128x128xbf16> to vector<1x128x128xbf16>
    tpu.vector_store %arg6[%c0_11, %c0_12, %c0_13], %30 {strides = array<i32>} : memref<1x128x128xbf16, #tpu.memory_space<vmem>>, vector<1x128x128xbf16>,
    %c0_14 = arith.constant 0 : index
    %c0_15 = arith.constant 0 : index
    %31 = vector.load %arg9[%c0_14, %c0_15] : memref<128x128xf32, #tpu.memory_space<vmem>>, vector<128x128xf32>
    %c0_16 = arith.constant 0 : index
    %c0_17 = arith.constant 0 : index
    %32 = vector.load %arg10[%c0_16, %c0_17] : memref<128x128xf32, #tpu.memory_space<vmem>>, vector<128x128xf32>
    %33 = arith.addf %31, %26 : vector<128x128xf32>
    %34 = arith.mulf %26, %26 : vector<128x128xf32>
    %35 = arith.addf %32, %34 : vector<128x128xf32>
    %c0_18 = arith.constant 0 : index
    %c0_19 = arith.constant 0 : index
    %36 = vector.load %arg9[%c0_18, %c0_19] : memref<128x128xf32, #tpu.memory_space<vmem>>, vector<128x128xf32>
    tpu.vector_store %arg9[%c0_18, %c0_19], %33 {strides = array<i32>} : memref<128x128xf32, #tpu.memory_space<vmem>>, vector<128x128xf32>,
    %c0_20 = arith.constant 0 : index
    %c0_21 = arith.constant 0 : index
    %37 = vector.load %arg10[%c0_20, %c0_21] : memref<128x128xf32, #tpu.memory_space<vmem>>, vector<128x128xf32>
    tpu.vector_store %arg10[%c0_20, %c0_21], %35 {strides = array<i32>} : memref<128x128xf32, #tpu.memory_space<vmem>>, vector<128x128xf32>,
    %c0_i32_22 = arith.constant 0 : i32
    %38 = arith.cmpi eq, %arg1, %c0_i32_22 : i32
    %39 = arith.extui %38 : i1 to i32
    %c0_i32_23 = arith.constant 0 : i32
    %40 = arith.cmpi ne, %39, %c0_i32_23 : i32
    scf.if %40 {
      %c0_24 = arith.constant 0 : index
      %c0_25 = arith.constant 0 : index
      %41 = vector.load %arg9[%c0_24, %c0_25] : memref<128x128xf32, #tpu.memory_space<vmem>>, vector<128x128xf32>
      %cst_26 = arith.constant dense<0.000000e+00> : vector<128xf32>
      %42 = vector.multi_reduction <add>, %41, %cst_26 [1] : vector<128x128xf32> to vector<128xf32>
      %43 = vector.shape_cast %42 : vector<128xf32> to vector<128x1xf32>
      %c0_27 = arith.constant 0 : index
      %c0_28 = arith.constant 0 : index
      %c0_29 = arith.constant 0 : index
      %44 = vector.load %arg7[%c0_27, %c0_28, %c0_29] : memref<1x128x1xf32, #tpu.memory_space<vmem>>, vector<1x128x1xf32>
      %45 = vector.shape_cast %44 : vector<1x128x1xf32> to vector<128x1xf32>
      %46 = vector.shape_cast %43 : vector<128x1xf32> to vector<1x128x1xf32>
      tpu.vector_store %arg7[%c0_27, %c0_28, %c0_29], %46 {strides = array<i32>} : memref<1x128x1xf32, #tpu.memory_space<vmem>>, vector<1x128x1xf32>,
      %c0_30 = arith.constant 0 : index
      %c0_31 = arith.constant 0 : index
      %47 = vector.load %arg10[%c0_30, %c0_31] : memref<128x128xf32, #tpu.memory_space<vmem>>, vector<128x128xf32>
      %cst_32 = arith.constant dense<0.000000e+00> : vector<128xf32>
      %48 = vector.multi_reduction <add>, %47, %cst_32 [1] : vector<128x128xf32> to vector<128xf32>
      %49 = vector.shape_cast %48 : vector<128xf32> to vector<128x1xf32>
      %c0_33 = arith.constant 0 : index
      %c0_34 = arith.constant 0 : index
      %c0_35 = arith.constant 0 : index
      %50 = vector.load %arg8[%c0_33, %c0_34, %c0_35] : memref<1x128x1xf32, #tpu.memory_space<vmem>>, vector<1x128x1xf32>
      %51 = vector.shape_cast %50 : vector<1x128x1xf32> to vector<128x1xf32>
      %52 = vector.shape_cast %49 : vector<128x1xf32> to vector<1x128x1xf32>
      tpu.vector_store %arg8[%c0_33, %c0_34, %c0_35], %52 {strides = array<i32>} : memref<1x128x1xf32, #tpu.memory_space<vmem>>, vector<1x128x1xf32>,
    } else {
    }
    return
  }
  func.func @transform_0(%arg0: i32, %arg1: i32) -> (i32, i32, i32) {
    %c0_i32 = arith.constant 0 : i32
    %c0_i32_0 = arith.constant 0 : i32
    return %arg0, %c0_i32, %arg1 : i32, i32, i32
  }
  func.func @transform_1(%arg0: i32, %arg1: i32) -> (i32, i32) {
    %c0_i32 = arith.constant 0 : i32
    %c0_i32_0 = arith.constant 0 : i32
    %c0_i32_1 = arith.constant 0 : i32
    return %c0_i32, %c0_i32_0 : i32, i32
  }
  func.func @transform_2(%arg0: i32, %arg1: i32) -> (i32, i32) {
    %c0_i32 = arith.constant 0 : i32
    %c0_i32_0 = arith.constant 0 : i32
    %c0_i32_1 = arith.constant 0 : i32
    return %c0_i32, %c0_i32_0 : i32, i32
  }
  func.func @transform_3(%arg0: i32, %arg1: i32) -> (i32, i32) {
    %c0_i32 = arith.constant 0 : i32
    %c0_i32_0 = arith.constant 0 : i32
    %c0_i32_1 = arith.constant 0 : i32
    return %c0_i32, %c0_i32_0 : i32, i32
  }
  func.func @transform_4(%arg0: i32, %arg1: i32) -> (i32, i32, i32) {
    %c0_i32 = arith.constant 0 : i32
    %c0_i32_0 = arith.constant 0 : i32
    return %arg0, %c0_i32, %arg1 : i32, i32, i32
  }
  func.func @transform_5(%arg0: i32, %arg1: i32) -> (i32, i32, i32) {
    %c0_i32 = arith.constant 0 : i32
    %c0_i32_0 = arith.constant 0 : i32
    %c0_i32_1 = arith.constant 0 : i32
    return %arg0, %c0_i32, %c0_i32_0 : i32, i32, i32
  }
  func.func @transform_6(%arg0: i32, %arg1: i32) -> (i32, i32, i32) {
    %c0_i32 = arith.constant 0 : i32
    %c0_i32_0 = arith.constant 0 : i32
    %c0_i32_1 = arith.constant 0 : i32
    return %arg0, %c0_i32, %c0_i32_0 : i32, i32, i32
  }
}

module attributes {stable_mosaic.version = 11 : i64} {
  func.func @kernel(%arg0: i32, %arg1: i32, %arg2: memref<1x128x128xbf16, #tpu.memory_space<vmem>>, %arg3: memref<128x1xf32, #tpu.memory_space<vmem>>, %arg4: memref<128x1xf32, #tpu.memory_space<vmem>>, %arg5: memref<32x128xbf16, #tpu.memory_space<vmem>>, %arg6: memref<1x32x1xf32, #tpu.memory_space<vmem>>, %arg7: memref<1x32x1xf32, #tpu.memory_space<vmem>>, %arg8: memref<1x32x1xf32, #tpu.memory_space<vmem>>, %arg9: memref<1x32x1xf32, #tpu.memory_space<vmem>>, %arg10: memref<32x128xf32, #tpu.memory_space<vmem>>, %arg11: memref<32x128xf32, #tpu.memory_space<vmem>>, %arg12: memref<32x128xf32, #tpu.memory_space<vmem>>, %arg13: memref<32x128xf32, #tpu.memory_space<vmem>>) attributes {dimension_semantics = [#tpu.dimension_semantics<parallel>, #tpu.dimension_semantics<arbitrary>], iteration_bounds = array<i64: 2, 1>, scalar_prefetch = 0 : i64, scratch_operands = 4 : i64, tpu.core_type = #tpu.core_type<tc>, window_params = [{transform_indices = @transform_0, window_bounds = array<i64: 1, 128, 128>}, {pipeline_mode = #tpu.pipeline_mode<synchronous>, transform_indices = @transform_1, window_bounds = array<i64: 128, 1>}, {pipeline_mode = #tpu.pipeline_mode<synchronous>, transform_indices = @transform_2, window_bounds = array<i64: 128, 1>}, {pipeline_mode = #tpu.pipeline_mode<synchronous>, transform_indices = @transform_3, window_bounds = array<i64: 32, 128>}, {transform_indices = @transform_4, window_bounds = array<i64: 1, 32, 1>}, {transform_indices = @transform_5, window_bounds = array<i64: 1, 32, 1>}, {transform_indices = @transform_6, window_bounds = array<i64: 1, 32, 1>}, {transform_indices = @transform_7, window_bounds = array<i64: 1, 32, 1>}]} {
    %c0_i32 = arith.constant 0 : i32
    %0 = arith.cmpi eq, %arg1, %c0_i32 : i32
    %1 = arith.extui %0 : i1 to i32
    %c0_i32_0 = arith.constant 0 : i32
    %2 = arith.cmpi ne, %1, %c0_i32_0 : i32
    scf.if %2 {
      %cst_24 = arith.constant 0.000000e+00 : f32
      %43 = vector.broadcast %cst_24 : f32 to vector<32x128xf32>
      %c0_25 = arith.constant 0 : index
      %c0_26 = arith.constant 0 : index
      %44 = vector.load %arg10[%c0_25, %c0_26] : memref<32x128xf32, #tpu.memory_space<vmem>>, vector<32x128xf32>
      tpu.vector_store %arg10[%c0_25, %c0_26], %43 {strides = array<i32>} : memref<32x128xf32, #tpu.memory_space<vmem>>, vector<32x128xf32>,
      %cst_27 = arith.constant 0.000000e+00 : f32
      %45 = vector.broadcast %cst_27 : f32 to vector<32x128xf32>
      %c0_28 = arith.constant 0 : index
      %c0_29 = arith.constant 0 : index
      %46 = vector.load %arg11[%c0_28, %c0_29] : memref<32x128xf32, #tpu.memory_space<vmem>>, vector<32x128xf32>
      tpu.vector_store %arg11[%c0_28, %c0_29], %45 {strides = array<i32>} : memref<32x128xf32, #tpu.memory_space<vmem>>, vector<32x128xf32>,
      %cst_30 = arith.constant 0xFF800000 : f32
      %47 = vector.broadcast %cst_30 : f32 to vector<32x128xf32>
      %c0_31 = arith.constant 0 : index
      %c0_32 = arith.constant 0 : index
      %48 = vector.load %arg12[%c0_31, %c0_32] : memref<32x128xf32, #tpu.memory_space<vmem>>, vector<32x128xf32>
      tpu.vector_store %arg12[%c0_31, %c0_32], %47 {strides = array<i32>} : memref<32x128xf32, #tpu.memory_space<vmem>>, vector<32x128xf32>,
      %cst_33 = arith.constant 0x7F800000 : f32
      %49 = vector.broadcast %cst_33 : f32 to vector<32x128xf32>
      %c0_34 = arith.constant 0 : index
      %c0_35 = arith.constant 0 : index
      %50 = vector.load %arg13[%c0_34, %c0_35] : memref<32x128xf32, #tpu.memory_space<vmem>>, vector<32x128xf32>
      tpu.vector_store %arg13[%c0_34, %c0_35], %49 {strides = array<i32>} : memref<32x128xf32, #tpu.memory_space<vmem>>, vector<32x128xf32>,
    } else {
    }
    %c0 = arith.constant 0 : index
    %c0_1 = arith.constant 0 : index
    %c0_2 = arith.constant 0 : index
    %3 = vector.load %arg2[%c0, %c0_1, %c0_2] : memref<1x128x128xbf16, #tpu.memory_space<vmem>>, vector<1x128x128xbf16>
    %4 = vector.shape_cast %3 : vector<1x128x128xbf16> to vector<128x128xbf16>
    %5 = arith.extf %4 : vector<128x128xbf16> to vector<128x128xf32>
    %c0_3 = arith.constant 0 : index
    %c0_4 = arith.constant 0 : index
    %6 = vector.load %arg3[%c0_3, %c0_4] : memref<128x1xf32, #tpu.memory_space<vmem>>, vector<128x1xf32>
    %7 = vector.broadcast %6 : vector<128x1xf32> to vector<128x128xf32>
    %8 = arith.mulf %5, %7 : vector<128x128xf32>
    %c0_5 = arith.constant 0 : index
    %c0_6 = arith.constant 0 : index
    %9 = vector.load %arg4[%c0_5, %c0_6] : memref<128x1xf32, #tpu.memory_space<vmem>>, vector<128x1xf32>
    %10 = vector.broadcast %9 : vector<128x1xf32> to vector<128x128xf32>
    %11 = arith.addf %8, %10 : vector<128x128xf32>
    %cst = arith.constant 0.000000e+00 : f32
    %12 = vector.broadcast %cst : f32 to vector<128x128xf32>
    %13 = arith.maximumf %11, %12 : vector<128x128xf32>
    %c128_i32 = arith.constant 128 : i32
    %14 = arith.muli %arg1, %c128_i32 : i32
    %15 = tpu.iota {dimensions = array<i32: 1>} : vector<1x128xi32>
    %16 = vector.broadcast %14 : i32 to vector<1x128xi32>
    %17 = arith.addi %16, %15 : vector<1x128xi32>
    %c16_i32 = arith.constant 16 : i32
    %18 = vector.broadcast %c16_i32 : i32 to vector<1x128xi32>
    %19 = arith.cmpi slt, %17, %18 : vector<1x128xi32>
    %cst_7 = arith.constant 0.000000e+00 : f32
    %20 = vector.shape_cast %19 : vector<1x128xi1> to vector<1x128xi1>
    %21 = vector.broadcast %20 : vector<1x128xi1> to vector<128x128xi1>
    %22 = vector.broadcast %cst_7 : f32 to vector<128x128xf32>
    %23 = arith.select %21, %13, %22 : vector<128x128xi1>, vector<128x128xf32>
    %c0_8 = arith.constant 0 : index
    %c0_9 = arith.constant 0 : index
    %24 = vector.load %arg5[%c0_8, %c0_9] : memref<32x128xbf16, #tpu.memory_space<vmem>>, vector<32x128xbf16>
    %25 = arith.truncf %23 : vector<128x128xf32> to vector<128x128xbf16>
    %cst_10 = arith.constant dense<0.000000e+00> : vector<32x128xf32>
    %26 = tpu.matmul %24, %25, %cst_10 {dimension_numbers = #tpu.dot_dimension_numbers<[1], [0], [0], [1], [0, 0, 1, 1], [], []>} : vector<32x128xbf16>, vector<128x128xbf16>, vector<32x128xf32> -> vector<32x128xf32>
    %c0_11 = arith.constant 0 : index
    %c0_12 = arith.constant 0 : index
    %27 = vector.load %arg10[%c0_11, %c0_12] : memref<32x128xf32, #tpu.memory_space<vmem>>, vector<32x128xf32>
    %c0_13 = arith.constant 0 : index
    %c0_14 = arith.constant 0 : index
    %28 = vector.load %arg11[%c0_13, %c0_14] : memref<32x128xf32, #tpu.memory_space<vmem>>, vector<32x128xf32>
    %29 = arith.addf %27, %26 : vector<32x128xf32>
    %30 = arith.mulf %26, %26 : vector<32x128xf32>
    %31 = arith.addf %28, %30 : vector<32x128xf32>
    %c0_15 = arith.constant 0 : index
    %c0_16 = arith.constant 0 : index
    %32 = vector.load %arg10[%c0_15, %c0_16] : memref<32x128xf32, #tpu.memory_space<vmem>>, vector<32x128xf32>
    tpu.vector_store %arg10[%c0_15, %c0_16], %29 {strides = array<i32>} : memref<32x128xf32, #tpu.memory_space<vmem>>, vector<32x128xf32>,
    %c0_17 = arith.constant 0 : index
    %c0_18 = arith.constant 0 : index
    %33 = vector.load %arg11[%c0_17, %c0_18] : memref<32x128xf32, #tpu.memory_space<vmem>>, vector<32x128xf32>
    tpu.vector_store %arg11[%c0_17, %c0_18], %31 {strides = array<i32>} : memref<32x128xf32, #tpu.memory_space<vmem>>, vector<32x128xf32>,
    %c0_i32_19 = arith.constant 0 : i32
    %34 = arith.cmpi eq, %arg1, %c0_i32_19 : i32
    %35 = arith.extui %34 : i1 to i32
    %c0_i32_20 = arith.constant 0 : i32
    %36 = arith.cmpi ne, %35, %c0_i32_20 : i32
    scf.if %36 {
      %c0_24 = arith.constant 0 : index
      %c0_25 = arith.constant 0 : index
      %43 = vector.load %arg12[%c0_24, %c0_25] : memref<32x128xf32, #tpu.memory_space<vmem>>, vector<32x128xf32>
      %c0_26 = arith.constant 0 : index
      %c0_27 = arith.constant 0 : index
      %44 = vector.load %arg13[%c0_26, %c0_27] : memref<32x128xf32, #tpu.memory_space<vmem>>, vector<32x128xf32>
      %cst_28 = arith.constant 0xFF800000 : f32
      %45 = vector.shape_cast %19 : vector<1x128xi1> to vector<1x128xi1>
      %46 = vector.broadcast %45 : vector<1x128xi1> to vector<32x128xi1>
      %47 = vector.broadcast %cst_28 : f32 to vector<32x128xf32>
      %48 = arith.select %46, %26, %47 : vector<32x128xi1>, vector<32x128xf32>
      %49 = arith.maximumf %43, %48 : vector<32x128xf32>
      %cst_29 = arith.constant 0x7F800000 : f32
      %50 = vector.shape_cast %19 : vector<1x128xi1> to vector<1x128xi1>
      %51 = vector.broadcast %50 : vector<1x128xi1> to vector<32x128xi1>
      %52 = vector.broadcast %cst_29 : f32 to vector<32x128xf32>
      %53 = arith.select %51, %26, %52 : vector<32x128xi1>, vector<32x128xf32>
      %54 = arith.minimumf %44, %53 : vector<32x128xf32>
      %c0_30 = arith.constant 0 : index
      %c0_31 = arith.constant 0 : index
      %55 = vector.load %arg12[%c0_30, %c0_31] : memref<32x128xf32, #tpu.memory_space<vmem>>, vector<32x128xf32>
      tpu.vector_store %arg12[%c0_30, %c0_31], %49 {strides = array<i32>} : memref<32x128xf32, #tpu.memory_space<vmem>>, vector<32x128xf32>,
      %c0_32 = arith.constant 0 : index
      %c0_33 = arith.constant 0 : index
      %56 = vector.load %arg13[%c0_32, %c0_33] : memref<32x128xf32, #tpu.memory_space<vmem>>, vector<32x128xf32>
      tpu.vector_store %arg13[%c0_32, %c0_33], %54 {strides = array<i32>} : memref<32x128xf32, #tpu.memory_space<vmem>>, vector<32x128xf32>,
    } else {
    }
    %true = arith.constant true
    %37 = arith.xori %34, %true : i1
    %38 = arith.extui %37 : i1 to i32
    %c0_i32_21 = arith.constant 0 : i32
    %39 = arith.cmpi ne, %38, %c0_i32_21 : i32
    scf.if %39 {
      %c0_24 = arith.constant 0 : index
      %c0_25 = arith.constant 0 : index
      %43 = vector.load %arg12[%c0_24, %c0_25] : memref<32x128xf32, #tpu.memory_space<vmem>>, vector<32x128xf32>
      %c0_26 = arith.constant 0 : index
      %c0_27 = arith.constant 0 : index
      %44 = vector.load %arg13[%c0_26, %c0_27] : memref<32x128xf32, #tpu.memory_space<vmem>>, vector<32x128xf32>
      %45 = arith.maximumf %43, %26 : vector<32x128xf32>
      %46 = arith.minimumf %44, %26 : vector<32x128xf32>
      %c0_28 = arith.constant 0 : index
      %c0_29 = arith.constant 0 : index
      %47 = vector.load %arg12[%c0_28, %c0_29] : memref<32x128xf32, #tpu.memory_space<vmem>>, vector<32x128xf32>
      tpu.vector_store %arg12[%c0_28, %c0_29], %45 {strides = array<i32>} : memref<32x128xf32, #tpu.memory_space<vmem>>, vector<32x128xf32>,
      %c0_30 = arith.constant 0 : index
      %c0_31 = arith.constant 0 : index
      %48 = vector.load %arg13[%c0_30, %c0_31] : memref<32x128xf32, #tpu.memory_space<vmem>>, vector<32x128xf32>
      tpu.vector_store %arg13[%c0_30, %c0_31], %46 {strides = array<i32>} : memref<32x128xf32, #tpu.memory_space<vmem>>, vector<32x128xf32>,
    } else {
    }
    %c0_i32_22 = arith.constant 0 : i32
    %40 = arith.cmpi eq, %arg1, %c0_i32_22 : i32
    %41 = arith.extui %40 : i1 to i32
    %c0_i32_23 = arith.constant 0 : i32
    %42 = arith.cmpi ne, %41, %c0_i32_23 : i32
    scf.if %42 {
      %c0_24 = arith.constant 0 : index
      %c0_25 = arith.constant 0 : index
      %43 = vector.load %arg10[%c0_24, %c0_25] : memref<32x128xf32, #tpu.memory_space<vmem>>, vector<32x128xf32>
      %cst_26 = arith.constant dense<0.000000e+00> : vector<32xf32>
      %44 = vector.multi_reduction <add>, %43, %cst_26 [1] : vector<32x128xf32> to vector<32xf32>
      %45 = vector.shape_cast %44 : vector<32xf32> to vector<32x1xf32>
      %c0_27 = arith.constant 0 : index
      %c0_28 = arith.constant 0 : index
      %c0_29 = arith.constant 0 : index
      %46 = vector.load %arg6[%c0_27, %c0_28, %c0_29] : memref<1x32x1xf32, #tpu.memory_space<vmem>>, vector<1x32x1xf32>
      %47 = vector.shape_cast %46 : vector<1x32x1xf32> to vector<32x1xf32>
      %48 = vector.shape_cast %45 : vector<32x1xf32> to vector<1x32x1xf32>
      tpu.vector_store %arg6[%c0_27, %c0_28, %c0_29], %48 {strides = array<i32>} : memref<1x32x1xf32, #tpu.memory_space<vmem>>, vector<1x32x1xf32>,
      %c0_30 = arith.constant 0 : index
      %c0_31 = arith.constant 0 : index
      %49 = vector.load %arg11[%c0_30, %c0_31] : memref<32x128xf32, #tpu.memory_space<vmem>>, vector<32x128xf32>
      %cst_32 = arith.constant dense<0.000000e+00> : vector<32xf32>
      %50 = vector.multi_reduction <add>, %49, %cst_32 [1] : vector<32x128xf32> to vector<32xf32>
      %51 = vector.shape_cast %50 : vector<32xf32> to vector<32x1xf32>
      %c0_33 = arith.constant 0 : index
      %c0_34 = arith.constant 0 : index
      %c0_35 = arith.constant 0 : index
      %52 = vector.load %arg7[%c0_33, %c0_34, %c0_35] : memref<1x32x1xf32, #tpu.memory_space<vmem>>, vector<1x32x1xf32>
      %53 = vector.shape_cast %52 : vector<1x32x1xf32> to vector<32x1xf32>
      %54 = vector.shape_cast %51 : vector<32x1xf32> to vector<1x32x1xf32>
      tpu.vector_store %arg7[%c0_33, %c0_34, %c0_35], %54 {strides = array<i32>} : memref<1x32x1xf32, #tpu.memory_space<vmem>>, vector<1x32x1xf32>,
      %c0_36 = arith.constant 0 : index
      %c0_37 = arith.constant 0 : index
      %55 = vector.load %arg12[%c0_36, %c0_37] : memref<32x128xf32, #tpu.memory_space<vmem>>, vector<32x128xf32>
      %cst_38 = arith.constant dense<0xFF800000> : vector<32xf32>
      %56 = vector.multi_reduction <maximumf>, %55, %cst_38 [1] : vector<32x128xf32> to vector<32xf32>
      %57 = vector.shape_cast %56 : vector<32xf32> to vector<32x1xf32>
      %c0_39 = arith.constant 0 : index
      %c0_40 = arith.constant 0 : index
      %c0_41 = arith.constant 0 : index
      %58 = vector.load %arg8[%c0_39, %c0_40, %c0_41] : memref<1x32x1xf32, #tpu.memory_space<vmem>>, vector<1x32x1xf32>
      %59 = vector.shape_cast %58 : vector<1x32x1xf32> to vector<32x1xf32>
      %60 = vector.shape_cast %57 : vector<32x1xf32> to vector<1x32x1xf32>
      tpu.vector_store %arg8[%c0_39, %c0_40, %c0_41], %60 {strides = array<i32>} : memref<1x32x1xf32, #tpu.memory_space<vmem>>, vector<1x32x1xf32>,
      %c0_42 = arith.constant 0 : index
      %c0_43 = arith.constant 0 : index
      %61 = vector.load %arg13[%c0_42, %c0_43] : memref<32x128xf32, #tpu.memory_space<vmem>>, vector<32x128xf32>
      %cst_44 = arith.constant dense<0x7F800000> : vector<32xf32>
      %62 = vector.multi_reduction <minimumf>, %61, %cst_44 [1] : vector<32x128xf32> to vector<32xf32>
      %63 = vector.shape_cast %62 : vector<32xf32> to vector<32x1xf32>
      %c0_45 = arith.constant 0 : index
      %c0_46 = arith.constant 0 : index
      %c0_47 = arith.constant 0 : index
      %64 = vector.load %arg9[%c0_45, %c0_46, %c0_47] : memref<1x32x1xf32, #tpu.memory_space<vmem>>, vector<1x32x1xf32>
      %65 = vector.shape_cast %64 : vector<1x32x1xf32> to vector<32x1xf32>
      %66 = vector.shape_cast %63 : vector<32x1xf32> to vector<1x32x1xf32>
      tpu.vector_store %arg9[%c0_45, %c0_46, %c0_47], %66 {strides = array<i32>} : memref<1x32x1xf32, #tpu.memory_space<vmem>>, vector<1x32x1xf32>,
    } else {
    }
    return
  }
  func.func @transform_0(%arg0: i32, %arg1: i32) -> (i32, i32, i32) {
    %c0_i32 = arith.constant 0 : i32
    %c0_i32_0 = arith.constant 0 : i32
    return %arg0, %c0_i32, %arg1 : i32, i32, i32
  }
  func.func @transform_1(%arg0: i32, %arg1: i32) -> (i32, i32) {
    %c0_i32 = arith.constant 0 : i32
    %c0_i32_0 = arith.constant 0 : i32
    %c0_i32_1 = arith.constant 0 : i32
    return %c0_i32, %c0_i32_0 : i32, i32
  }
  func.func @transform_2(%arg0: i32, %arg1: i32) -> (i32, i32) {
    %c0_i32 = arith.constant 0 : i32
    %c0_i32_0 = arith.constant 0 : i32
    %c0_i32_1 = arith.constant 0 : i32
    return %c0_i32, %c0_i32_0 : i32, i32
  }
  func.func @transform_3(%arg0: i32, %arg1: i32) -> (i32, i32) {
    %c0_i32 = arith.constant 0 : i32
    %c0_i32_0 = arith.constant 0 : i32
    %c0_i32_1 = arith.constant 0 : i32
    return %c0_i32, %c0_i32_0 : i32, i32
  }
  func.func @transform_4(%arg0: i32, %arg1: i32) -> (i32, i32, i32) {
    %c0_i32 = arith.constant 0 : i32
    %c0_i32_0 = arith.constant 0 : i32
    %c0_i32_1 = arith.constant 0 : i32
    return %arg0, %c0_i32, %c0_i32_0 : i32, i32, i32
  }
  func.func @transform_5(%arg0: i32, %arg1: i32) -> (i32, i32, i32) {
    %c0_i32 = arith.constant 0 : i32
    %c0_i32_0 = arith.constant 0 : i32
    %c0_i32_1 = arith.constant 0 : i32
    return %arg0, %c0_i32, %c0_i32_0 : i32, i32, i32
  }
  func.func @transform_6(%arg0: i32, %arg1: i32) -> (i32, i32, i32) {
    %c0_i32 = arith.constant 0 : i32
    %c0_i32_0 = arith.constant 0 : i32
    %c0_i32_1 = arith.constant 0 : i32
    return %arg0, %c0_i32, %c0_i32_0 : i32, i32, i32
  }
  func.func @transform_7(%arg0: i32, %arg1: i32) -> (i32, i32, i32) {
    %c0_i32 = arith.constant 0 : i32
    %c0_i32_0 = arith.constant 0 : i32
    %c0_i32_1 = arith.constant 0 : i32
    return %arg0, %c0_i32, %c0_i32_0 : i32, i32, i32
  }
}

module attributes {stable_mosaic.version = 11 : i64} {
  func.func @_head_kernel(%arg0: memref<2x32xf32, #tpu.memory_space<vmem>>, %arg1: memref<32x32xf32, #tpu.memory_space<vmem>>, %arg2: memref<1x32xf32, #tpu.memory_space<vmem>>, %arg3: memref<1x32xf32, #tpu.memory_space<vmem>>, %arg4: memref<1x32xf32, #tpu.memory_space<vmem>>, %arg5: memref<32x32xf32, #tpu.memory_space<vmem>>, %arg6: memref<1x32xf32, #tpu.memory_space<vmem>>, %arg7: memref<1x32xf32, #tpu.memory_space<vmem>>, %arg8: memref<1x32xf32, #tpu.memory_space<vmem>>, %arg9: memref<2x32xf32, #tpu.memory_space<vmem>>) attributes {dimension_semantics = [], scalar_prefetch = 0 : i64, scratch_operands = 0 : i64, tpu.core_type = #tpu.core_type<tc>} {
    %c0 = arith.constant 0 : index
    %c0_0 = arith.constant 0 : index
    %0 = vector.load %arg0[%c0, %c0_0] : memref<2x32xf32, #tpu.memory_space<vmem>>, vector<2x32xf32>
    %c0_1 = arith.constant 0 : index
    %c0_2 = arith.constant 0 : index
    %1 = vector.load %arg1[%c0_1, %c0_2] : memref<32x32xf32, #tpu.memory_space<vmem>>, vector<32x32xf32>
    %c0_3 = arith.constant 0 : index
    %c0_4 = arith.constant 0 : index
    %2 = vector.load %arg2[%c0_3, %c0_4] : memref<1x32xf32, #tpu.memory_space<vmem>>, vector<1x32xf32>
    %c0_5 = arith.constant 0 : index
    %c0_6 = arith.constant 0 : index
    %3 = vector.load %arg3[%c0_5, %c0_6] : memref<1x32xf32, #tpu.memory_space<vmem>>, vector<1x32xf32>
    %c0_7 = arith.constant 0 : index
    %c0_8 = arith.constant 0 : index
    %4 = vector.load %arg4[%c0_7, %c0_8] : memref<1x32xf32, #tpu.memory_space<vmem>>, vector<1x32xf32>
    %cst = arith.constant dense<0.000000e+00> : vector<2x32xf32>
    %5 = tpu.matmul %0, %1, %cst {dimension_numbers = #tpu.dot_dimension_numbers<[1], [0], [0], [1], [0, 0, 1, 1], [], []>} : vector<2x32xf32>, vector<32x32xf32>, vector<2x32xf32> -> vector<2x32xf32>
    %6 = vector.broadcast %2 : vector<1x32xf32> to vector<2x32xf32>
    %7 = arith.addf %5, %6 : vector<2x32xf32>
    %cst_9 = arith.constant dense<0.000000e+00> : vector<32xf32>
    %8 = vector.multi_reduction <add>, %7, %cst_9 [0] : vector<2x32xf32> to vector<32xf32>
    %9 = vector.shape_cast %8 : vector<32xf32> to vector<1x32xf32>
    %cst_10 = arith.constant 2.000000e+00 : f32
    %10 = vector.broadcast %cst_10 : f32 to vector<1x32xf32>
    %11 = arith.divf %9, %10 : vector<1x32xf32>
    %12 = arith.mulf %7, %7 : vector<2x32xf32>
    %cst_11 = arith.constant dense<0.000000e+00> : vector<32xf32>
    %13 = vector.multi_reduction <add>, %12, %cst_11 [0] : vector<2x32xf32> to vector<32xf32>
    %14 = vector.shape_cast %13 : vector<32xf32> to vector<1x32xf32>
    %cst_12 = arith.constant 2.000000e+00 : f32
    %15 = vector.broadcast %cst_12 : f32 to vector<1x32xf32>
    %16 = arith.divf %14, %15 : vector<1x32xf32>
    %17 = arith.mulf %11, %11 : vector<1x32xf32>
    %18 = arith.subf %16, %17 : vector<1x32xf32>
    %cst_13 = arith.constant 0.000000e+00 : f32
    %19 = vector.broadcast %cst_13 : f32 to vector<1x32xf32>
    %20 = arith.maximumf %18, %19 : vector<1x32xf32>
    %21 = vector.broadcast %11 : vector<1x32xf32> to vector<2x32xf32>
    %22 = arith.subf %7, %21 : vector<2x32xf32>
    %cst_14 = arith.constant 9.99999974E-6 : f32
    %23 = vector.broadcast %cst_14 : f32 to vector<1x32xf32>
    %24 = arith.addf %20, %23 : vector<1x32xf32>
    %25 = math.rsqrt %24 : vector<1x32xf32>
    %26 = vector.broadcast %25 : vector<1x32xf32> to vector<2x32xf32>
    %27 = arith.mulf %22, %26 : vector<2x32xf32>
    %28 = vector.broadcast %3 : vector<1x32xf32> to vector<2x32xf32>
    %29 = arith.mulf %27, %28 : vector<2x32xf32>
    %30 = vector.broadcast %4 : vector<1x32xf32> to vector<2x32xf32>
    %31 = arith.addf %29, %30 : vector<2x32xf32>
    %cst_15 = arith.constant 0.000000e+00 : f32
    %32 = vector.broadcast %cst_15 : f32 to vector<2x32xf32>
    %33 = arith.maximumf %31, %32 : vector<2x32xf32>
    %c0_16 = arith.constant 0 : index
    %c0_17 = arith.constant 0 : index
    %34 = vector.load %arg5[%c0_16, %c0_17] : memref<32x32xf32, #tpu.memory_space<vmem>>, vector<32x32xf32>
    %c0_18 = arith.constant 0 : index
    %c0_19 = arith.constant 0 : index
    %35 = vector.load %arg6[%c0_18, %c0_19] : memref<1x32xf32, #tpu.memory_space<vmem>>, vector<1x32xf32>
    %c0_20 = arith.constant 0 : index
    %c0_21 = arith.constant 0 : index
    %36 = vector.load %arg7[%c0_20, %c0_21] : memref<1x32xf32, #tpu.memory_space<vmem>>, vector<1x32xf32>
    %c0_22 = arith.constant 0 : index
    %c0_23 = arith.constant 0 : index
    %37 = vector.load %arg8[%c0_22, %c0_23] : memref<1x32xf32, #tpu.memory_space<vmem>>, vector<1x32xf32>
    %cst_24 = arith.constant dense<0.000000e+00> : vector<2x32xf32>
    %38 = tpu.matmul %33, %34, %cst_24 {dimension_numbers = #tpu.dot_dimension_numbers<[1], [0], [0], [1], [0, 0, 1, 1], [], []>} : vector<2x32xf32>, vector<32x32xf32>, vector<2x32xf32> -> vector<2x32xf32>
    %39 = vector.broadcast %35 : vector<1x32xf32> to vector<2x32xf32>
    %40 = arith.addf %38, %39 : vector<2x32xf32>
    %cst_25 = arith.constant dense<0.000000e+00> : vector<32xf32>
    %41 = vector.multi_reduction <add>, %40, %cst_25 [0] : vector<2x32xf32> to vector<32xf32>
    %42 = vector.shape_cast %41 : vector<32xf32> to vector<1x32xf32>
    %cst_26 = arith.constant 2.000000e+00 : f32
    %43 = vector.broadcast %cst_26 : f32 to vector<1x32xf32>
    %44 = arith.divf %42, %43 : vector<1x32xf32>
    %45 = arith.mulf %40, %40 : vector<2x32xf32>
    %cst_27 = arith.constant dense<0.000000e+00> : vector<32xf32>
    %46 = vector.multi_reduction <add>, %45, %cst_27 [0] : vector<2x32xf32> to vector<32xf32>
    %47 = vector.shape_cast %46 : vector<32xf32> to vector<1x32xf32>
    %cst_28 = arith.constant 2.000000e+00 : f32
    %48 = vector.broadcast %cst_28 : f32 to vector<1x32xf32>
    %49 = arith.divf %47, %48 : vector<1x32xf32>
    %50 = arith.mulf %44, %44 : vector<1x32xf32>
    %51 = arith.subf %49, %50 : vector<1x32xf32>
    %cst_29 = arith.constant 0.000000e+00 : f32
    %52 = vector.broadcast %cst_29 : f32 to vector<1x32xf32>
    %53 = arith.maximumf %51, %52 : vector<1x32xf32>
    %54 = vector.broadcast %44 : vector<1x32xf32> to vector<2x32xf32>
    %55 = arith.subf %40, %54 : vector<2x32xf32>
    %cst_30 = arith.constant 9.99999974E-6 : f32
    %56 = vector.broadcast %cst_30 : f32 to vector<1x32xf32>
    %57 = arith.addf %53, %56 : vector<1x32xf32>
    %58 = math.rsqrt %57 : vector<1x32xf32>
    %59 = vector.broadcast %58 : vector<1x32xf32> to vector<2x32xf32>
    %60 = arith.mulf %55, %59 : vector<2x32xf32>
    %61 = vector.broadcast %36 : vector<1x32xf32> to vector<2x32xf32>
    %62 = arith.mulf %60, %61 : vector<2x32xf32>
    %63 = vector.broadcast %37 : vector<1x32xf32> to vector<2x32xf32>
    %64 = arith.addf %62, %63 : vector<2x32xf32>
    %cst_31 = arith.constant 0.000000e+00 : f32
    %65 = vector.broadcast %cst_31 : f32 to vector<2x32xf32>
    %66 = arith.maximumf %64, %65 : vector<2x32xf32>
    %c0_32 = arith.constant 0 : index
    %c0_33 = arith.constant 0 : index
    %67 = vector.load %arg9[%c0_32, %c0_33] : memref<2x32xf32, #tpu.memory_space<vmem>>, vector<2x32xf32>
    tpu.vector_store %arg9[%c0_32, %c0_33], %66 {strides = array<i32>} : memref<2x32xf32, #tpu.memory_space<vmem>>, vector<2x32xf32>,
    return
  }
}

</mosaic_0001>

<bundles_post_ra>
// kernel: pointnet_forward.4
= control target key start
LH: loop header
LB: loop body
LE: loop exit
PB: predicated region body
PF: predicated region fallthrough
CT: control target
= control target key end

     0   :  { %s774_s15 = smov 0   ;;  %s776_s16 = smov 0   ;;  %s856_s0 = inlined_call_operand.vmem [shape: f32[2,8,128], index: 0, kind: input, shape index: {}]   ;;  %s857_s1 = inlined_call_operand.vmem [shape: bf16[64,8], index: 1, kind: input, shape index: {}]   ;;  %s858_s2 = inlined_call_operand.vmem [shape: bf16[2,64,128], index: 2, kind: output, shape index: {0}]   ;;  %s859_s3 = inlined_call_operand.vmem [shape: f32[2,64,1], index: 3, kind: output, shape index: {1}]   ;;  %s860_s4 = inlined_call_operand.vmem [shape: f32[2,64,1], index: 4, kind: output, shape index: {2}]  }
   0x1   :  { %s778_s17 = smov 0  }
   0x2 LB: > { %s27_s18 = sadd.s32 1, %s743_s16  ;;  %p638_p0 = scmp.ge.s32.totalorder %s747_s17, 1  ;;  %s747_s17 = sphi %s778_s17, %s15_s17   ;;  %s743_s16 = sphi %s776_s16, %s862_s16   ;;  %s739_s15 = sphi %s774_s15, %s861_s15  }
   0x3   : > { %p29_p1 = scmp.ge.s32.totalorder %s27_s18, 2  ;;  %p185_p2 = scmp.lt.s32.totalorder %s747_s17, 3 }
   0x5   : > { %s864_s18 = smov (%p29_p1, %s27_s18), 0  ;;  %p186_p3 = pnand %p638_p0, %p185_p2 }
   0x6   : > { %p226_p4 = scmp.lt.s32.totalorder (!%p186_p3), %s739_s15, 1 }
   0x7   : > { %189 = sbr.rel (%p186_p3) target bundleno = 305 (0x131), region = 28 }
   0xc   : > { %s866_s15 = smov (!%p226_p4, %s739_s15), 1  ;;  %vm315_vm0 = vcmask 1043456   ;;  %v671_v3 = vld [vmem:[%s857_s1] sm:$0xff]  ;;  %v672_v4 = vld [vmem:[%s857_s1 + $0x8] sm:$0xff]  ;;  %vm302_vm1 = vcmask 64512   ;;  %v674_v5 = vld [vmem:[%s857_s1 + $0x18] sm:$0xff] }
   0xd   : > { %s639_s19 = sshll.u32 %s866_s15, 3  ;;  %v673_v6 = vld [vmem:[%s857_s1 + $0x10] sm:$0xff]  ;;  %s668_s5 = sshll.u32 %s866_s15, 5  ;;  %vm447_vm2 = vcmask 7168  }
   0xe   : > { %s232_s22 = scalar_lea.vmem %s856_s0, %s639_s19  ;;  %s240_s8 = scalar_lea.vmem %s858_s2, %s668_s5 }
   0xf   : > { %v272_v0 = vld [vmem:[%s232_s22] sm:$0xff]  ;;  %s669_s9 = sshll.u32 %s866_s15, 6 }
  0x10   : > { %v273_v1 = vpack.c.bf16 %v272_v0, %v272_v0  ;;  %s245_s12 = scalar_lea.vmem %s859_s3, %s669_s9  ;;  %s821_s19 = scalar_lea.vmem %s860_s4, %s669_s9 }
  0x12   : > { %v317_v2 = vsel %vm315_vm0, %v273_v1, 0 }
  0x13   : > { %326 = vmatpush.bf16.msra.mxu0 %v317_v2  ;;  %698 = vmatpush.bf16.msra.mxu1 %v317_v2 }
  0x14   : > { %700 = vmatpush.bf16.msra.mxu3 %v317_v2  ;;  %699 = vmatpush.bf16.msra.mxu2 %v317_v2 }
  0x16   : > { %662 = vmatmul.msk.bf16.vlgmr.msra.gmra.mxu0 %vm302_vm1, %v671_v3  ;;  %663 = vmatmul.msk.bf16.vlgmr.msra.gmra.mxu1 %vm302_vm1, %v672_v4 }
  0x17   : > { %665 = vmatmul.msk.bf16.vlgmr.msra.gmra.mxu3 %vm302_vm1, %v674_v5  ;;  %664 = vmatmul.msk.bf16.vlgmr.msra.gmra.mxu2 %vm302_vm1, %v673_v6 }
  0x93   : > { %v328_v7 = vpop.f32.mrf.mxu0  ;;  %v333_v8 = vpop.f32.mrf.mxu1 }
  0x94   : > { %435 = vadd.xlane.f32.xlu1 %v333_v8  ;;  %431 = vadd.xlane.f32.xlu0 %v328_v7  ;;  %v388_v9 = vmul.f32 %v328_v7, %v328_v7  ;;  %v390_v10 = vmul.f32 %v333_v8, %v333_v8 }
  0x96   : > { %464 = vadd.xlane.f32.xlu2 %v388_v9 }
  0x9a   : > { %v343_v11 = vpop.f32.mrf.mxu3  ;;  %v338_v12 = vpop.f32.mrf.mxu2 }
  0x9b   : > { %v330_v13 = vpop.f32.mrf.mxu0  ;;  %v335_v14 = vpop.f32.mrf.mxu1  ;;  %v392_v22 = vmul.f32 %v338_v12, %v338_v12  ;;  %v394_v25 = vmul.f32 %v343_v11, %v343_v11 }
  0x9c   : > { %v678_v15 = vpack.c.bf16 %v330_v13, %v328_v7  ;;  %v683_v16 = vpack.c.bf16 %v335_v14, %v333_v8  ;;  %468 = vadd.xlane.f32.xlu1 %v390_v10  ;;  %443 = vadd.xlane.f32.xlu0 %v343_v11  ;;  %v391_v21 = vmul.f32 %v335_v14, %v335_v14 }
  0x9d   : > { %v389_v24 = vmul.f32 %v330_v13, %v330_v13 }
  0x9e   : > { %679 = vst [vmem:[%s240_s8] sm:$0xff] %v678_v15   ;;  %439 = vadd.xlane.f32.xlu2 %v338_v12 }
  0x9f   : > { %695 = vst [vmem:[%s240_s8 + $0x8] sm:$0xff] %v683_v16  }
  0xa2   : > { %v345_v17 = vpop.f32.mrf.mxu3  ;;  %v340_v18 = vpop.f32.mrf.mxu2 }
  0xa3   : > { %v693_v19 = vpack.c.bf16 %v345_v17, %v343_v11  ;;  %v688_v20 = vpack.c.bf16 %v340_v18, %v338_v12  ;;  %v393_v23 = vmul.f32 %v340_v18, %v340_v18  ;;  %v395_v26 = vmul.f32 %v345_v17, %v345_v17 }
  0xa4   : > { %437 = vadd.xlane.f32.xlu1 %v335_v14  ;;  %433 = vadd.xlane.f32.xlu0 %v330_v13 }
  0xa5   : > { %697 = vst [vmem:[%s240_s8 + $0x18] sm:$0xff] %v693_v19  }
  0xa6   : > { %696 = vst [vmem:[%s240_s8 + $0x10] sm:$0xff] %v688_v20   ;;  %470 = vadd.xlane.f32.xlu2 %v391_v21 }
  0xac   : > { %445 = vadd.xlane.f32.xlu1 %v345_v17  ;;  %472 = vadd.xlane.f32.xlu0 %v392_v22 }
  0xae   : > { %441 = vadd.xlane.f32.xlu2 %v340_v18 }
  0xb4   : > { %474 = vadd.xlane.f32.xlu1 %v393_v23  ;;  %466 = vadd.xlane.f32.xlu0 %v389_v24 }
  0xb6   : > { %476 = vadd.xlane.f32.xlu2 %v394_v25 }
  0xbc   : > { %478 = vadd.xlane.f32.xlu0 %v395_v26 }
 0x107   : > { %v436_v27 = vpop.xlane.xlu1 %435  ;;  %v432_v28 = vpop.xlane.xlu0 %431 }
 0x108   : > { %450 = vst.msk [vmem:[%s245_s12 + $0x10] sm:$0xff] %vm447_vm2, %v436_v27 }
 0x109   : > { %448 = vst.msk [vmem:[%s245_s12] sm:$0xff] %vm447_vm2, %v432_v28  ;;  %v465_v29 = vpop.xlane.xlu2 %464 }
 0x10a   : > { %480 = vst.msk [vmem:[%s821_s19] sm:$0xff] %vm447_vm2, %v465_v29 }
 0x10f   : > { %v469_v30 = vpop.xlane.xlu1 %468  ;;  %v444_v31 = vpop.xlane.xlu0 %443 }
 0x110   : > { %482 = vst.msk [vmem:[%s821_s19 + $0x10] sm:$0xff] %vm447_vm2, %v469_v30 }
 0x111   : > { %454 = vst.msk [vmem:[%s245_s12 + $0x30] sm:$0xff] %vm447_vm2, %v444_v31  ;;  %v440_v32 = vpop.xlane.xlu2 %439 }
 0x112   : > { %452 = vst.msk [vmem:[%s245_s12 + $0x20] sm:$0xff] %vm447_vm2, %v440_v32 }
 0x117   : > { %v438_v33 = vpop.xlane.xlu1 %437  ;;  %v434_v34 = vpop.xlane.xlu0 %433 }
 0x118   : > { %451 = vst.msk [vmem:[%s245_s12 + $0x18] sm:$0xff] %vm447_vm2, %v438_v33 }
 0x119   : > { %449 = vst.msk [vmem:[%s245_s12 + $0x8] sm:$0xff] %vm447_vm2, %v434_v34  ;;  %v471_v35 = vpop.xlane.xlu2 %470 }
 0x11a   : > { %483 = vst.msk [vmem:[%s821_s19 + $0x18] sm:$0xff] %vm447_vm2, %v471_v35 }
 0x11f   : > { %v446_v36 = vpop.xlane.xlu1 %445  ;;  %v473_v37 = vpop.xlane.xlu0 %472 }
 0x120   : > { %455 = vst.msk [vmem:[%s245_s12 + $0x38] sm:$0xff] %vm447_vm2, %v446_v36 }
 0x121   : > { %484 = vst.msk [vmem:[%s821_s19 + $0x20] sm:$0xff] %vm447_vm2, %v473_v37  ;;  %v442_v38 = vpop.xlane.xlu2 %441 }
 0x122   : > { %453 = vst.msk [vmem:[%s245_s12 + $0x28] sm:$0xff] %vm447_vm2, %v442_v38 }
 0x127   : > { %v475_v39 = vpop.xlane.xlu1 %474  ;;  %v467_v40 = vpop.xlane.xlu0 %466 }
 0x128   : > { %485 = vst.msk [vmem:[%s821_s19 + $0x28] sm:$0xff] %vm447_vm2, %v475_v39 }
 0x129   : > { %481 = vst.msk [vmem:[%s821_s19 + $0x8] sm:$0xff] %vm447_vm2, %v467_v40  ;;  %v477_v41 = vpop.xlane.xlu2 %476 }
 0x12a   : > { %486 = vst.msk [vmem:[%s821_s19 + $0x30] sm:$0xff] %vm447_vm2, %v477_v41 }
 0x12f   : > { %v479_v42 = vpop.xlane.xlu0 %478 }
 0x130   : > { %487 = vst.msk [vmem:[%s821_s19 + $0x38] sm:$0xff] %vm447_vm2, %v479_v42 }
 0x131 PF: > { %s15_s17 = sadd.s32 1, %s747_s17   ;;  %s861_s15 = smov %s743_s16 }
 0x132   : > { %p12_p5 = scmp.ge.s32.totalorder %s15_s17, 4   ;;  %s862_s16 = smov %s864_s18 }
 0x134   :  { %14 = sbr.rel (!%p12_p5) target bundleno = 2 (0x2), region = 90 }

// kernel: pointnet_forward.5
= control target key start
LH: loop header
LB: loop body
LE: loop exit
PB: predicated region body
PF: predicated region fallthrough
CT: control target
= control target key end

     0   :  { %s1301_s21 = smov 0   ;;  %s1303_s22 = smov 0   ;;  %s1549_s0 = inlined_call_operand.vmem [shape: bf16[2,64,128], index: 0, kind: input, shape index: {}]   ;;  %s1550_s1 = inlined_call_operand.vmem [shape: f32[64,1], index: 1, kind: input, shape index: {}]   ;;  %s1551_s2 = inlined_call_operand.vmem [shape: f32[64,1], index: 2, kind: input, shape index: {}]   ;;  %s1552_s3 = inlined_call_operand.vmem [shape: bf16[128,64], index: 3, kind: input, shape index: {}]   ;;  %s1553_s4 = inlined_call_operand.vmem [shape: bf16[2,128,128], index: 4, kind: output, shape index: {0}]   ;;  %s1554_s5 = inlined_call_operand.vmem [shape: f32[2,128,1], index: 5, kind: output, shape index: {1}]   ;;  %s1555_s6 = inlined_call_operand.vmem [shape: f32[2,128,1], index: 6, kind: output, shape index: {2}]  }
   0x1   :  { %s1305_s23 = smov 0  }
   0x2 LB: > { %s29_s24 = sadd.s32 1, %s1259_s22  ;;  %p1060_p0 = scmp.ge.s32.totalorder %s1263_s23, 1  ;;  %s1263_s23 = sphi %s1305_s23, %s17_s23   ;;  %s1259_s22 = sphi %s1303_s22, %s1559_s22   ;;  %s1255_s21 = sphi %s1301_s21, %s1558_s21  }
   0x3   : > { %p31_p1 = scmp.ge.s32.totalorder %s29_s24, 2  ;;  %p236_p2 = scmp.lt.s32.totalorder %s1263_s23, 3 }
   0x5   : > { %s1561_s24 = smov (%p31_p1, %s29_s24), 0  ;;  %p237_p3 = pnand %p1060_p0, %p236_p2 }
   0x6   : > { %p282_p4 = scmp.lt.s32.totalorder (!%p237_p3), %s1255_s21, 1 }
   0x7   : > { %240 = sbr.rel (%p237_p3) target bundleno = 504 (0x1f8), region = 36 }
   0xc   : > { %v423_v0 = vld [vmem:[%s1551_s2 + $0x30] sm:$0xff]  ;;  %v365_v2 = vld [vmem:[%s1550_s1 + $0x20] sm:$0xff]  ;;  %v1265_v3 = vmov 0   ;;  %v424_v4 = vld [vmem:[%s1551_s2 + $0x38] sm:$0xff]  ;;  %s1563_s21 = smov (!%p282_p4, %s1255_s21), 1  ;;  %v482_v22 = vlaneseq  ;;  %vm557_vm2 = vcmask 523264  }
   0xd   : > { %v367_v1 = vld [vmem:[%s1550_s1 + $0x30] sm:$0xff]  ;;  %1240 = vset.pattern.permute.xlu2 %v1265_v3  ;;  %1239 = vset.pattern.permute.xlu1 %v1265_v3  ;;  %v368_v5 = vld [vmem:[%s1550_s1 + $0x38] sm:$0xff]  ;;  %v366_v6 = vld [vmem:[%s1550_s1 + $0x28] sm:$0xff]  ;;  %s1123_s13 = sshll.u32 %s1563_s21, 5  ;;  %s1125_s17 = sshll.u32 %s1563_s21, 7  ;;  %vm826_vm3 = vcmask 7168  }
   0xe   : > { %1238 = vset.pattern.permute.xlu0 %v1265_v3  ;;  %457 = vperm.xlu1 %1239, %v423_v0   ;;  %v422_v7 = vld [vmem:[%s1551_s2 + $0x28] sm:$0xff]  ;;  %v421_v8 = vld [vmem:[%s1551_s2 + $0x20] sm:$0xff]  ;;  %v363_v9 = vld [vmem:[%s1550_s1 + $0x10] sm:$0xff]  ;;  %s1377_s16 = scalar_lea.vmem %s1549_s0, %s1123_s13  ;;  %v483_v28 = vand.u32 127, %v482_v22  ;;  %s1124_s13 = sshll.u32 %s1563_s21, 6 }
   0xf   : > { %401 = vperm.xlu0 %1238, %v367_v1   ;;  %391 = vperm.xlu2 %1240, %v365_v2   ;;  %v419_v10 = vld [vmem:[%s1551_s2 + $0x10] sm:$0xff]  ;;  %v364_v11 = vld [vmem:[%s1550_s1 + $0x18] sm:$0xff]  ;;  %v362_v13 = vld [vmem:[%s1550_s1 + $0x8] sm:$0xff]  ;;  %s1469_s20 = scalar_lea.vmem %s1554_s5, %s1125_s17  ;;  %s1474_s27 = scalar_lea.vmem %s1555_s6, %s1125_s17 }
  0x10   : > { %v420_v12 = vld [vmem:[%s1551_s2 + $0x18] sm:$0xff]  ;;  %v417_v14 = vld [vmem:[%s1551_s2] sm:$0xff]  ;;  %v418_v16 = vld [vmem:[%s1551_s2 + $0x8] sm:$0xff]  ;;  %vm486_vm0 = vcmp.lt.s32.totalorder %v483_v28, 16 }
  0x11   : > { %v361_v15 = vld [vmem:[%s1550_s1] sm:$0xff]  ;;  %v1193_v18 = vld [vmem:[%s1377_s16 + $0x18] sm:$0xff]   ;;  %v1192_v26 = vld [vmem:[%s1377_s16 + $0x10] sm:$0xff]  }
  0x12   : > { %v1149_v21 = vunpack.c.l.bf16 %v1193_v18  ;;  %v1150_v24 = vunpack.c.h.bf16 %v1193_v18  ;;  %v1146_v32 = vunpack.c.h.bf16 %v1192_v26  ;;  %v1145_v33 = vunpack.c.l.bf16 %v1192_v26  ;;  %vm1381_vm1 = vmpackc.low %vm486_vm0, %vm486_vm0  ;;  %v1191_v43 = vld [vmem:[%s1377_s16 + $0x8] sm:$0xff]   ;;  %v1136_v59 = vld [vmem:[%s1377_s16] sm:$0xff]   ;;  %s1455_s16 = scalar_lea.vmem %s1553_s4, %s1124_s13 }
  0x13   : > { %v1141_v48 = vunpack.c.l.bf16 %v1191_v43  ;;  %v1142_v51 = vunpack.c.h.bf16 %v1191_v43  ;;  %v1137_v63 = vunpack.c.l.bf16 %v1136_v59  ;;  %v1138_v1 = vunpack.c.h.bf16 %v1136_v59  ;;  %v1134_v18 = vld [vmem:[%s1552_s3 + $0x38] sm:$0xff] }
  0x16   : > { %462 = vperm.xlu1 %1239, %v424_v4  }
  0x17   : > { %406 = vperm.xlu0 %1238, %v368_v5   ;;  %396 = vperm.xlu2 %1240, %v366_v6  }
  0x1e   : > { %452 = vperm.xlu1 %1239, %v422_v7  }
  0x1f   : > { %447 = vperm.xlu0 %1238, %v421_v8   ;;  %381 = vperm.xlu2 %1240, %v363_v9  }
  0x26   : > { %437 = vperm.xlu1 %1239, %v419_v10  }
  0x27   : > { %386 = vperm.xlu0 %1238, %v364_v11   ;;  %442 = vperm.xlu2 %1240, %v420_v12   ;;  %v1127_v12 = vld [vmem:[%s1552_s3] sm:$0xff] }
  0x2e   : > { %376 = vperm.xlu1 %1239, %v362_v13   ;;  %v1129_v13 = vld [vmem:[%s1552_s3 + $0x10] sm:$0xff] }
  0x2f   : > { %427 = vperm.xlu2 %1240, %v417_v14   ;;  %371 = vperm.xlu0 %1238, %v361_v15   ;;  %v1131_v14 = vld [vmem:[%s1552_s3 + $0x20] sm:$0xff]  ;;  %v1133_v15 = vld [vmem:[%s1552_s3 + $0x30] sm:$0xff] }
  0x37   : > { %432 = vperm.xlu0 %1238, %v418_v16   ;;  %v1128_v16 = vld [vmem:[%s1552_s3 + $0x8] sm:$0xff] }
  0x69   : > { %v392_v17 = vpop.permute.xlu2 %391 }
  0x6a   : > { %v413_v39 = vmul.f32 %v1145_v33, %v392_v17  ;;  %v1130_v17 = vld [vmem:[%s1552_s3 + $0x18] sm:$0xff] }
  0x71   : > { %v397_v25 = vpop.permute.xlu2 %396 }
  0x72   : > { %v414_v37 = vmul.f32 %v1146_v32, %v397_v25 }
  0x79   : > { %v382_v42 = vpop.permute.xlu2 %381 }
  0x7a   : > { %v411_v52 = vmul.f32 %v1141_v48, %v382_v42 }
  0x80   : > { %v458_v19 = vpop.permute.xlu1 %457 }
  0x81   : > { %v402_v20 = vpop.permute.xlu0 %401  ;;  %v443_v57 = vpop.permute.xlu2 %442 }
  0x82   : > { %v415_v23 = vmul.f32 %v1149_v21, %v402_v20 }
  0x84   : > { %v471_v30 = vadd.f32 %v458_v19, %v415_v23  ;;  %v1132_v19 = vld [vmem:[%s1552_s3 + $0x28] sm:$0xff] }
  0x86   : > { %v479_v35 = vmax.f32 %v471_v30, 0.0 }
  0x88   : > { %v463_v27 = vpop.permute.xlu1 %462 }
  0x89   : > { %v407_v29 = vpop.permute.xlu0 %406  ;;  %v428_v4 = vpop.permute.xlu2 %427 }
  0x8a   : > { %v416_v31 = vmul.f32 %v1150_v24, %v407_v29 }
  0x8c   : > { %v472_v34 = vadd.f32 %v463_v27, %v416_v31 }
  0x8e   : > { %v480_v36 = vmax.f32 %v472_v34, 0.0 }
  0x90   : > { %v1102_v40 = vpack.c.bf16 %v480_v36, %v479_v35  ;;  %v453_v41 = vpop.permute.xlu1 %452 }
  0x91   : > { %v470_v44 = vadd.f32 %v453_v41, %v414_v37  ;;  %v448_v45 = vpop.permute.xlu0 %447 }
  0x92   : > { %v469_v46 = vadd.f32 %v448_v45, %v413_v39  ;;  %1103 = vmatpush.bf16.msk.msra.mxu0 %vm1381_vm1, %v1102_v40  ;;  %1201 = vmatpush.bf16.msk.msra.mxu1 %vm1381_vm1, %v1102_v40 }
  0x93   : > { %v478_v47 = vmax.f32 %v470_v44, 0.0  ;;  %1202 = vmatpush.bf16.msk.msra.mxu2 %vm1381_vm1, %v1102_v40  ;;  %1203 = vmatpush.bf16.msk.msra.mxu3 %vm1381_vm1, %v1102_v40 }
  0x94   : > { %v477_v49 = vmax.f32 %v469_v46, 0.0 }
  0x96   : > { %v1105_v50 = vpack.c.bf16 %v478_v47, %v477_v49 }
  0x98   : > { %1106 = vmatpush.bf16.msk.msra.mxu0 %vm1381_vm1, %v1105_v50  ;;  %1204 = vmatpush.bf16.msk.msra.mxu1 %vm1381_vm1, %v1105_v50  ;;  %v438_v53 = vpop.permute.xlu1 %437 }
  0x99   : > { %1205 = vmatpush.bf16.msk.msra.mxu2 %vm1381_vm1, %v1105_v50  ;;  %1206 = vmatpush.bf16.msk.msra.mxu3 %vm1381_vm1, %v1105_v50  ;;  %v387_v54 = vpop.permute.xlu0 %386  ;;  %v467_v55 = vadd.f32 %v438_v53, %v411_v52 }
  0x9a   : > { %v412_v56 = vmul.f32 %v1142_v51, %v387_v54 }
  0x9b   : > { %v475_v60 = vmax.f32 %v467_v55, 0.0 }
  0x9c   : > { %v468_v58 = vadd.f32 %v443_v57, %v412_v56 }
  0x9e   : > { %v476_v61 = vmax.f32 %v468_v58, 0.0 }
  0xa0   : > { %v1108_v62 = vpack.c.bf16 %v476_v61, %v475_v60  ;;  %v377_v3 = vpop.permute.xlu1 %376 }
  0xa1   : > { %v372_v0 = vpop.permute.xlu0 %371  ;;  %v410_v5 = vmul.f32 %v1138_v1, %v377_v3 }
  0xa2   : > { %1109 = vmatpush.bf16.msk.msra.mxu0 %vm1381_vm1, %v1108_v62  ;;  %1207 = vmatpush.bf16.msk.msra.mxu1 %vm1381_vm1, %v1108_v62  ;;  %v409_v2 = vmul.f32 %v1137_v63, %v372_v0 }
  0xa3   : > { %1208 = vmatpush.bf16.msk.msra.mxu2 %vm1381_vm1, %v1108_v62  ;;  %1209 = vmatpush.bf16.msk.msra.mxu3 %vm1381_vm1, %v1108_v62 }
  0xa4   : > { %v465_v6 = vadd.f32 %v428_v4, %v409_v2 }
  0xa6   : > { %v473_v9 = vmax.f32 %v465_v6, 0.0 }
  0xa9   : > { %v433_v7 = vpop.permute.xlu0 %432 }
  0xaa   : > { %v466_v8 = vadd.f32 %v433_v7, %v410_v5 }
  0xac   : > { %v474_v10 = vmax.f32 %v466_v8, 0.0 }
  0xae   : > { %v1111_v11 = vpack.c.bf16 %v474_v10, %v473_v9 }
  0xb0   : > { %1112 = vmatpush.bf16.msk.msra.mxu0 %vm1381_vm1, %v1111_v11  ;;  %1210 = vmatpush.bf16.msk.msra.mxu1 %vm1381_vm1, %v1111_v11 }
  0xb1   : > { %1211 = vmatpush.bf16.msk.msra.mxu2 %vm1381_vm1, %v1111_v11  ;;  %1212 = vmatpush.bf16.msk.msra.mxu3 %vm1381_vm1, %v1111_v11 }
  0xb3   : > { %1113 = vmatmul.msk.bf16.vlgmr.msra.gmra.mxu0 %vm557_vm2, %v1127_v12  ;;  %1115 = vmatmul.msk.bf16.vlgmr.msra.gmra.mxu1 %vm557_vm2, %v1129_v13 }
  0xb4   : > { %1117 = vmatmul.msk.bf16.vlgmr.msra.gmra.mxu2 %vm557_vm2, %v1131_v14  ;;  %1119 = vmatmul.msk.bf16.vlgmr.msra.gmra.mxu3 %vm557_vm2, %v1133_v15 }
  0xc3   : > { %1114 = vmatmul.msk.bf16.gmra.mxu0 %vm557_vm2, %v1128_v16  ;;  %1116 = vmatmul.msk.bf16.gmra.mxu1 %vm557_vm2, %v1130_v17 }
  0xc4   : > { %1120 = vmatmul.msk.bf16.gmra.mxu3 %vm557_vm2, %v1134_v18  ;;  %1118 = vmatmul.msk.bf16.gmra.mxu2 %vm557_vm2, %v1132_v19 }
 0x130   : > { %v591_v20 = vpop.f32.mrf.mxu0  ;;  %v601_v21 = vpop.f32.mrf.mxu1 }
 0x131   : > { %794 = vadd.xlane.f32.xlu1 %v591_v20  ;;  %v715_v22 = vmul.f32 %v601_v21, %v601_v21  ;;  %v711_v32 = vmul.f32 %v591_v20, %v591_v20 }
 0x133   : > { %867 = vadd.xlane.f32.xlu2 %v715_v22 }
 0x137   : > { %v611_v23 = vpop.f32.mrf.mxu2  ;;  %v621_v24 = vpop.f32.mrf.mxu3 }
 0x138   : > { %818 = vadd.xlane.f32.xlu0 %v621_v24  ;;  %v593_v25 = vpop.f32.mrf.mxu0  ;;  %v603_v26 = vpop.f32.mrf.mxu1  ;;  %v719_v29 = vmul.f32 %v611_v23, %v611_v23  ;;  %v723_v38 = vmul.f32 %v621_v24, %v621_v24 }
 0x139   : > { %v1154_v27 = vpack.c.bf16 %v593_v25, %v591_v20  ;;  %v1164_v28 = vpack.c.bf16 %v603_v26, %v601_v21  ;;  %802 = vadd.xlane.f32.xlu1 %v601_v21  ;;  %v716_v37 = vmul.f32 %v603_v26, %v603_v26  ;;  %v712_v49 = vmul.f32 %v593_v25, %v593_v25 }
 0x13b   : > { %1155 = vst [vmem:[%s1455_s16] sm:$0xff] %v1154_v27   ;;  %810 = vadd.xlane.f32.xlu2 %v611_v23 }
 0x13c   : > { %1195 = vst [vmem:[%s1455_s16 + $0x10] sm:$0xff] %v1164_v28  }
 0x13f   : > { %v613_v30 = vpop.f32.mrf.mxu2  ;;  %v623_v31 = vpop.f32.mrf.mxu3 }
 0x140   : > { %v1174_v33 = vpack.c.bf16 %v613_v30, %v611_v23  ;;  %v1184_v34 = vpack.c.bf16 %v623_v31, %v621_v24  ;;  %875 = vadd.xlane.f32.xlu0 %v719_v29  ;;  %v596_v35 = vpop.f32.mrf.mxu0  ;;  %v606_v36 = vpop.f32.mrf.mxu1  ;;  %v720_v50 = vmul.f32 %v613_v30, %v613_v30  ;;  %v724_v59 = vmul.f32 %v623_v31, %v623_v31 }
 0x141   : > { %859 = vadd.xlane.f32.xlu1 %v711_v32  ;;  %v717_v51 = vmul.f32 %v606_v36, %v606_v36  ;;  %v713_v52 = vmul.f32 %v596_v35, %v596_v35 }
 0x142   : > { %1197 = vst [vmem:[%s1455_s16 + $0x20] sm:$0xff] %v1174_v33  }
 0x143   : > { %1199 = vst [vmem:[%s1455_s16 + $0x30] sm:$0xff] %v1184_v34   ;;  %796 = vadd.xlane.f32.xlu2 %v593_v25 }
 0x147   : > { %v626_v39 = vpop.f32.mrf.mxu3  ;;  %v616_v40 = vpop.f32.mrf.mxu2 }
 0x148   : > { %869 = vadd.xlane.f32.xlu0 %v716_v37  ;;  %v598_v41 = vpop.f32.mrf.mxu0  ;;  %v608_v42 = vpop.f32.mrf.mxu1  ;;  %v721_v53 = vmul.f32 %v616_v40, %v616_v40  ;;  %v725_v57 = vmul.f32 %v626_v39, %v626_v39 }
 0x149   : > { %883 = vadd.xlane.f32.xlu1 %v723_v38  ;;  %v1159_v43 = vpack.c.bf16 %v598_v41, %v596_v35  ;;  %v1169_v44 = vpack.c.bf16 %v608_v42, %v606_v36  ;;  %v718_v54 = vmul.f32 %v608_v42, %v608_v42  ;;  %v714_v56 = vmul.f32 %v598_v41, %v598_v41 }
 0x14b   : > { %804 = vadd.xlane.f32.xlu2 %v603_v26  ;;  %1194 = vst [vmem:[%s1455_s16 + $0x8] sm:$0xff] %v1159_v43  }
 0x14c   : > { %1196 = vst [vmem:[%s1455_s16 + $0x18] sm:$0xff] %v1169_v44  }
 0x14f   : > { %v628_v45 = vpop.f32.mrf.mxu3  ;;  %v618_v46 = vpop.f32.mrf.mxu2 }
 0x150   : > { %812 = vadd.xlane.f32.xlu0 %v613_v30  ;;  %v1189_v47 = vpack.c.bf16 %v628_v45, %v626_v39  ;;  %v1179_v48 = vpack.c.bf16 %v618_v46, %v616_v40  ;;  %v722_v55 = vmul.f32 %v618_v46, %v618_v46  ;;  %v726_v58 = vmul.f32 %v628_v45, %v628_v45 }
 0x151   : > { %820 = vadd.xlane.f32.xlu1 %v623_v31 }
 0x152   : > { %1200 = vst [vmem:[%s1455_s16 + $0x38] sm:$0xff] %v1189_v47  }
 0x153   : > { %861 = vadd.xlane.f32.xlu2 %v712_v49  ;;  %1198 = vst [vmem:[%s1455_s16 + $0x28] sm:$0xff] %v1179_v48  }
 0x158   : > { %798 = vadd.xlane.f32.xlu0 %v596_v35 }
 0x159   : > { %877 = vadd.xlane.f32.xlu1 %v720_v50 }
 0x15b   : > { %822 = vadd.xlane.f32.xlu2 %v626_v39 }
 0x160   : > { %806 = vadd.xlane.f32.xlu0 %v606_v36 }
 0x161   : > { %871 = vadd.xlane.f32.xlu1 %v717_v51 }
 0x163   : > { %800 = vadd.xlane.f32.xlu2 %v598_v41 }
 0x168   : > { %863 = vadd.xlane.f32.xlu0 %v713_v52 }
 0x169   : > { %814 = vadd.xlane.f32.xlu1 %v616_v40 }
 0x16b   : > { %879 = vadd.xlane.f32.xlu2 %v721_v53 }
 0x170   : > { %824 = vadd.xlane.f32.xlu0 %v628_v45 }
 0x171   : > { %808 = vadd.xlane.f32.xlu1 %v608_v42 }
 0x173   : > { %873 = vadd.xlane.f32.xlu2 %v718_v54 }
 0x178   : > { %881 = vadd.xlane.f32.xlu0 %v722_v55 }
 0x179   : > { %865 = vadd.xlane.f32.xlu1 %v714_v56 }
 0x17b   : > { %816 = vadd.xlane.f32.xlu2 %v618_v46 }
 0x180   : > { %887 = vadd.xlane.f32.xlu0 %v725_v57 }
 0x181   : > { %889 = vadd.xlane.f32.xlu1 %v726_v58 }
 0x183   : > { %885 = vadd.xlane.f32.xlu2 %v724_v59 }
 0x1a4   : > { %v795_v60 = vpop.xlane.xlu1 %794 }
 0x1a5   : > { %827 = vst.msk [vmem:[%s1469_s20] sm:$0xff] %vm826_vm3, %v795_v60 }
 0x1a6   : > { %v868_v61 = vpop.xlane.xlu2 %867 }
 0x1a7   : > { %895 = vst.msk [vmem:[%s1474_s27 + $0x20] sm:$0xff] %vm826_vm3, %v868_v61 }
 0x1ab   : > { %v819_v62 = vpop.xlane.xlu0 %818 }
 0x1ac   : > { %839 = vst.msk [vmem:[%s1469_s20 + $0x60] sm:$0xff] %vm826_vm3, %v819_v62  ;;  %v803_v63 = vpop.xlane.xlu1 %802 }
 0x1ad   : > { %831 = vst.msk [vmem:[%s1469_s20 + $0x20] sm:$0xff] %vm826_vm3, %v803_v63 }
 0x1ae   : > { %v811_v0 = vpop.xlane.xlu2 %810 }
 0x1af   : > { %835 = vst.msk [vmem:[%s1469_s20 + $0x40] sm:$0xff] %vm826_vm3, %v811_v0 }
 0x1b3   : > { %v876_v1 = vpop.xlane.xlu0 %875 }
 0x1b4   : > { %899 = vst.msk [vmem:[%s1474_s27 + $0x40] sm:$0xff] %vm826_vm3, %v876_v1  ;;  %v860_v2 = vpop.xlane.xlu1 %859 }
 0x1b5   : > { %891 = vst.msk [vmem:[%s1474_s27] sm:$0xff] %vm826_vm3, %v860_v2 }
 0x1b6   : > { %v797_v3 = vpop.xlane.xlu2 %796 }
 0x1b7   : > { %828 = vst.msk [vmem:[%s1469_s20 + $0x8] sm:$0xff] %vm826_vm3, %v797_v3 }
 0x1bb   : > { %v870_v4 = vpop.xlane.xlu0 %869 }
 0x1bc   : > { %896 = vst.msk [vmem:[%s1474_s27 + $0x28] sm:$0xff] %vm826_vm3, %v870_v4  ;;  %v884_v5 = vpop.xlane.xlu1 %883 }
 0x1bd   : > { %903 = vst.msk [vmem:[%s1474_s27 + $0x60] sm:$0xff] %vm826_vm3, %v884_v5 }
 0x1be   : > { %v805_v6 = vpop.xlane.xlu2 %804 }
 0x1bf   : > { %832 = vst.msk [vmem:[%s1469_s20 + $0x28] sm:$0xff] %vm826_vm3, %v805_v6 }
 0x1c3   : > { %v813_v7 = vpop.xlane.xlu0 %812 }
 0x1c4   : > { %836 = vst.msk [vmem:[%s1469_s20 + $0x48] sm:$0xff] %vm826_vm3, %v813_v7  ;;  %v821_v8 = vpop.xlane.xlu1 %820 }
 0x1c5   : > { %840 = vst.msk [vmem:[%s1469_s20 + $0x68] sm:$0xff] %vm826_vm3, %v821_v8 }
 0x1c6   : > { %v862_v9 = vpop.xlane.xlu2 %861 }
 0x1c7   : > { %892 = vst.msk [vmem:[%s1474_s27 + $0x8] sm:$0xff] %vm826_vm3, %v862_v9 }
 0x1cb   : > { %v799_v10 = vpop.xlane.xlu0 %798 }
 0x1cc   : > { %829 = vst.msk [vmem:[%s1469_s20 + $0x10] sm:$0xff] %vm826_vm3, %v799_v10  ;;  %v878_v11 = vpop.xlane.xlu1 %877 }
 0x1cd   : > { %900 = vst.msk [vmem:[%s1474_s27 + $0x48] sm:$0xff] %vm826_vm3, %v878_v11 }
 0x1ce   : > { %v823_v12 = vpop.xlane.xlu2 %822 }
 0x1cf   : > { %841 = vst.msk [vmem:[%s1469_s20 + $0x70] sm:$0xff] %vm826_vm3, %v823_v12 }
 0x1d3   : > { %v807_v13 = vpop.xlane.xlu0 %806 }
 0x1d4   : > { %833 = vst.msk [vmem:[%s1469_s20 + $0x30] sm:$0xff] %vm826_vm3, %v807_v13  ;;  %v872_v14 = vpop.xlane.xlu1 %871 }
 0x1d5   : > { %897 = vst.msk [vmem:[%s1474_s27 + $0x30] sm:$0xff] %vm826_vm3, %v872_v14 }
 0x1d6   : > { %v801_v15 = vpop.xlane.xlu2 %800 }
 0x1d7   : > { %830 = vst.msk [vmem:[%s1469_s20 + $0x18] sm:$0xff] %vm826_vm3, %v801_v15 }
 0x1db   : > { %v864_v16 = vpop.xlane.xlu0 %863 }
 0x1dc   : > { %893 = vst.msk [vmem:[%s1474_s27 + $0x10] sm:$0xff] %vm826_vm3, %v864_v16  ;;  %v815_v17 = vpop.xlane.xlu1 %814 }
 0x1dd   : > { %837 = vst.msk [vmem:[%s1469_s20 + $0x50] sm:$0xff] %vm826_vm3, %v815_v17 }
 0x1de   : > { %v880_v18 = vpop.xlane.xlu2 %879 }
 0x1df   : > { %901 = vst.msk [vmem:[%s1474_s27 + $0x50] sm:$0xff] %vm826_vm3, %v880_v18 }
 0x1e3   : > { %v825_v19 = vpop.xlane.xlu0 %824 }
 0x1e4   : > { %842 = vst.msk [vmem:[%s1469_s20 + $0x78] sm:$0xff] %vm826_vm3, %v825_v19  ;;  %v809_v20 = vpop.xlane.xlu1 %808 }
 0x1e5   : > { %834 = vst.msk [vmem:[%s1469_s20 + $0x38] sm:$0xff] %vm826_vm3, %v809_v20 }
 0x1e6   : > { %v874_v21 = vpop.xlane.xlu2 %873 }
 0x1e7   : > { %898 = vst.msk [vmem:[%s1474_s27 + $0x38] sm:$0xff] %vm826_vm3, %v874_v21 }
 0x1eb   : > { %v882_v22 = vpop.xlane.xlu0 %881 }
 0x1ec   : > { %902 = vst.msk [vmem:[%s1474_s27 + $0x58] sm:$0xff] %vm826_vm3, %v882_v22  ;;  %v866_v23 = vpop.xlane.xlu1 %865 }
 0x1ed   : > { %894 = vst.msk [vmem:[%s1474_s27 + $0x18] sm:$0xff] %vm826_vm3, %v866_v23 }
 0x1ee   : > { %v817_v24 = vpop.xlane.xlu2 %816 }
 0x1ef   : > { %838 = vst.msk [vmem:[%s1469_s20 + $0x58] sm:$0xff] %vm826_vm3, %v817_v24 }
 0x1f3   : > { %v888_v25 = vpop.xlane.xlu0 %887 }
 0x1f4   : > { %905 = vst.msk [vmem:[%s1474_s27 + $0x70] sm:$0xff] %vm826_vm3, %v888_v25  ;;  %v890_v26 = vpop.xlane.xlu1 %889 }
 0x1f5   : > { %906 = vst.msk [vmem:[%s1474_s27 + $0x78] sm:$0xff] %vm826_vm3, %v890_v26 }
 0x1f6   : > { %v886_v27 = vpop.xlane.xlu2 %885 }
 0x1f7   : > { %904 = vst.msk [vmem:[%s1474_s27 + $0x68] sm:$0xff] %vm826_vm3, %v886_v27 }
 0x1f8 PF: > { %s17_s23 = sadd.s32 1, %s1263_s23   ;;  %s1558_s21 = smov %s1259_s22 }
 0x1f9   : > { %p14_p5 = scmp.ge.s32.totalorder %s17_s23, 4   ;;  %s1559_s22 = smov %s1561_s24 }
 0x1fb   :  { %16 = sbr.rel (!%p14_p5) target bundleno = 2 (0x2), region = 98 }

// kernel: pointnet_forward.6
= control target key start
LH: loop header
LB: loop body
LE: loop exit
PB: predicated region body
PF: predicated region fallthrough
CT: control target
= control target key end

     0   :  { %s1221_s24 = smov 0   ;;  %s1223_s25 = smov 0   ;;  %s1457_s0 = inlined_call_operand.vmem [shape: bf16[2,128,128], index: 0, kind: input, shape index: {}]   ;;  %s1458_s1 = inlined_call_operand.vmem [shape: f32[128,1], index: 1, kind: input, shape index: {}]   ;;  %s1459_s2 = inlined_call_operand.vmem [shape: f32[128,1], index: 2, kind: input, shape index: {}]   ;;  %s1460_s3 = inlined_call_operand.vmem [shape: bf16[32,128], index: 3, kind: input, shape index: {}]   ;;  %s1461_s4 = inlined_call_operand.vmem [shape: f32[2,32,1], index: 4, kind: output, shape index: {0}]   ;;  %s1462_s5 = inlined_call_operand.vmem [shape: f32[2,32,1], index: 5, kind: output, shape index: {1}]   ;;  %s1463_s6 = inlined_call_operand.vmem [shape: f32[2,32,1], index: 6, kind: output, shape index: {2}]   ;;  %s1464_s7 = inlined_call_operand.vmem [shape: f32[2,32,1], index: 7, kind: output, shape index: {3}]  }
   0x1   :  { %s1225_s26 = smov 0  }
   0x2 LB: > { %s30_s27 = sadd.s32 1, %s1174_s25  ;;  %p1029_p0 = scmp.ge.s32.totalorder %s1178_s26, 1  ;;  %s1178_s26 = sphi %s1225_s26, %s18_s26   ;;  %s1174_s25 = sphi %s1223_s25, %s1468_s25   ;;  %s1170_s24 = sphi %s1221_s24, %s1467_s24  }
   0x3   : > { %p32_p1 = scmp.ge.s32.totalorder %s30_s27, 2  ;;  %p261_p2 = scmp.lt.s32.totalorder %s1178_s26, 3 }
   0x5   : > { %s1470_s27 = smov (%p32_p1, %s30_s27), 0  ;;  %p262_p3 = pnand %p1029_p0, %p261_p2 }
   0x6   : > { %p311_p4 = scmp.lt.s32.totalorder (!%p262_p3), %s1170_s24, 1 }
   0x7   : > { %265 = sbr.rel (%p262_p3) target bundleno = 502 (0x1f6), region = 36 }
   0xc   : > { %v517_v0 = vld [vmem:[%s1459_s2 + $0x70] sm:$0xff]  ;;  %v403_v2 = vld [vmem:[%s1458_s1 + $0x60] sm:$0xff]  ;;  %v1180_v3 = vmov 0   ;;  %v518_v4 = vld [vmem:[%s1459_s2 + $0x78] sm:$0xff]  ;;  %s1472_s24 = smov (!%p311_p4, %s1170_s24), 1  ;;  %v632_v39 = vlaneseq  ;;  %vm804_vm2 = vcmask 7168  }
   0xd   : > { %v405_v1 = vld [vmem:[%s1458_s1 + $0x70] sm:$0xff]  ;;  %1155 = vset.pattern.permute.xlu2 %v1180_v3  ;;  %1154 = vset.pattern.permute.xlu1 %v1180_v3  ;;  %v406_v5 = vld [vmem:[%s1458_s1 + $0x78] sm:$0xff]  ;;  %v404_v6 = vld [vmem:[%s1458_s1 + $0x68] sm:$0xff]  ;;  %s1074_s12 = sshll.u32 %s1472_s24, 6  ;;  %s1075_s20 = sshll.u32 %s1472_s24, 5 }
   0xe   : > { %1153 = vset.pattern.permute.xlu0 %v1180_v3  ;;  %591 = vperm.xlu1 %1154, %v517_v0   ;;  %v516_v7 = vld [vmem:[%s1459_s2 + $0x68] sm:$0xff]  ;;  %v515_v8 = vld [vmem:[%s1459_s2 + $0x60] sm:$0xff]  ;;  %v401_v9 = vld [vmem:[%s1458_s1 + $0x50] sm:$0xff]  ;;  %s1345_s15 = scalar_lea.vmem %s1457_s0, %s1074_s12  ;;  %v1349_v45 = vand.u32 127, %v632_v39  ;;  %s323_s23 = scalar_lea.vmem %s1461_s4, %s1075_s20 }
   0xf   : > { %479 = vperm.xlu0 %1153, %v405_v1   ;;  %469 = vperm.xlu2 %1155, %v403_v2   ;;  %v513_v10 = vld [vmem:[%s1459_s2 + $0x50] sm:$0xff]  ;;  %v402_v11 = vld [vmem:[%s1458_s1 + $0x58] sm:$0xff]  ;;  %v400_v13 = vld [vmem:[%s1458_s1 + $0x48] sm:$0xff]  ;;  %s333_s30 = scalar_lea.vmem %s1463_s6, %s1075_s20  ;;  %s338_s9 = scalar_lea.vmem %s1464_s7, %s1075_s20 }
  0x10   : > { %v514_v12 = vld [vmem:[%s1459_s2 + $0x58] sm:$0xff]  ;;  %v511_v14 = vld [vmem:[%s1459_s2 + $0x40] sm:$0xff]  ;;  %v397_v16 = vld [vmem:[%s1458_s1 + $0x30] sm:$0xff]  ;;  %vm636_vm0 = vcmp.lt.s32.totalorder %v1349_v45, 16  ;;  %s328_s12 = scalar_lea.vmem %s1462_s5, %s1075_s20 }
  0x11   : > { %v399_v15 = vld [vmem:[%s1458_s1 + $0x40] sm:$0xff]  ;;  %v512_v17 = vld [vmem:[%s1459_s2 + $0x48] sm:$0xff]  ;;  %v398_v18 = vld [vmem:[%s1458_s1 + $0x38] sm:$0xff] }
  0x12   : > { %v510_v19 = vld [vmem:[%s1459_s2 + $0x38] sm:$0xff]  ;;  %v509_v20 = vld [vmem:[%s1459_s2 + $0x30] sm:$0xff]  ;;  %v395_v21 = vld [vmem:[%s1458_s1 + $0x20] sm:$0xff] }
  0x13   : > { %v507_v22 = vld [vmem:[%s1459_s2 + $0x20] sm:$0xff]  ;;  %v396_v23 = vld [vmem:[%s1458_s1 + $0x28] sm:$0xff]  ;;  %v394_v25 = vld [vmem:[%s1458_s1 + $0x18] sm:$0xff] }
  0x14   : > { %v508_v24 = vld [vmem:[%s1459_s2 + $0x28] sm:$0xff]  ;;  %v505_v26 = vld [vmem:[%s1459_s2 + $0x10] sm:$0xff]  ;;  %v391_v28 = vld [vmem:[%s1458_s1] sm:$0xff] }
  0x15   : > { %v393_v27 = vld [vmem:[%s1458_s1 + $0x10] sm:$0xff]  ;;  %v506_v29 = vld [vmem:[%s1459_s2 + $0x18] sm:$0xff]  ;;  %v392_v30 = vld [vmem:[%s1458_s1 + $0x8] sm:$0xff] }
  0x16   : > { %596 = vperm.xlu1 %1154, %v518_v4   ;;  %v504_v31 = vld [vmem:[%s1459_s2 + $0x8] sm:$0xff]  ;;  %v503_v32 = vld [vmem:[%s1459_s2] sm:$0xff]  ;;  %v1119_v35 = vld [vmem:[%s1345_s15 + $0x38] sm:$0xff]  }
  0x17   : > { %484 = vperm.xlu0 %1153, %v406_v5   ;;  %474 = vperm.xlu2 %1155, %v404_v6   ;;  %v1111_v38 = vunpack.c.l.bf16 %v1119_v35  ;;  %v1112_v42 = vunpack.c.h.bf16 %v1119_v35  ;;  %v1118_v43 = vld [vmem:[%s1345_s15 + $0x30] sm:$0xff]   ;;  %vm1355_vm1 = vmpackc.low %vm636_vm0, %vm636_vm0  ;;  %v1117_v60 = vld [vmem:[%s1345_s15 + $0x28] sm:$0xff]  }
  0x18   : > { %v1108_v49 = vunpack.c.h.bf16 %v1118_v43  ;;  %v1107_v50 = vunpack.c.l.bf16 %v1118_v43  ;;  %v1103_v1 = vunpack.c.l.bf16 %v1117_v60  ;;  %v1104_v4 = vunpack.c.h.bf16 %v1117_v60 }
  0x1e   : > { %586 = vperm.xlu1 %1154, %v516_v7  }
  0x1f   : > { %581 = vperm.xlu0 %1153, %v515_v8   ;;  %459 = vperm.xlu2 %1155, %v401_v9  }
  0x26   : > { %571 = vperm.xlu1 %1154, %v513_v10  }
  0x27   : > { %464 = vperm.xlu0 %1153, %v402_v11   ;;  %576 = vperm.xlu2 %1155, %v514_v12   ;;  %v1116_v12 = vld [vmem:[%s1345_s15 + $0x20] sm:$0xff]  }
  0x2e   : > { %454 = vperm.xlu1 %1154, %v400_v13  }
  0x2f   : > { %561 = vperm.xlu2 %1155, %v511_v14   ;;  %449 = vperm.xlu0 %1153, %v399_v15  }
  0x36   : > { %439 = vperm.xlu1 %1154, %v397_v16   ;;  %v1099_v16 = vunpack.c.l.bf16 %v1116_v12 }
  0x37   : > { %566 = vperm.xlu0 %1153, %v512_v17   ;;  %444 = vperm.xlu2 %1155, %v398_v18  }
  0x3e   : > { %556 = vperm.xlu1 %1154, %v510_v19  }
  0x3f   : > { %551 = vperm.xlu0 %1153, %v509_v20   ;;  %429 = vperm.xlu2 %1155, %v395_v21   ;;  %v1100_v20 = vunpack.c.h.bf16 %v1116_v12 }
  0x46   : > { %541 = vperm.xlu1 %1154, %v507_v22   ;;  %v1115_v22 = vld [vmem:[%s1345_s15 + $0x18] sm:$0xff]  }
  0x47   : > { %434 = vperm.xlu0 %1153, %v396_v23   ;;  %546 = vperm.xlu2 %1155, %v508_v24  }
  0x4e   : > { %424 = vperm.xlu1 %1154, %v394_v25  }
  0x4f   : > { %531 = vperm.xlu2 %1155, %v505_v26   ;;  %419 = vperm.xlu0 %1153, %v393_v27  }
  0x56   : > { %409 = vperm.xlu1 %1154, %v391_v28   ;;  %v1096_v28 = vunpack.c.h.bf16 %v1115_v22 }
  0x57   : > { %536 = vperm.xlu0 %1153, %v506_v29   ;;  %414 = vperm.xlu2 %1155, %v392_v30  }
  0x5e   : > { %526 = vperm.xlu1 %1154, %v504_v31   ;;  %v1095_v31 = vunpack.c.l.bf16 %v1115_v22  ;;  %v1079_v22 = vld [vmem:[%s1460_s3] sm:$0xff] }
  0x5f   : > { %521 = vperm.xlu0 %1153, %v503_v32  }
  0x69   : > { %v470_v33 = vpop.permute.xlu2 %469 }
  0x6a   : > { %v499_v56 = vmul.f32 %v1107_v50, %v470_v33 }
  0x71   : > { %v475_v34 = vpop.permute.xlu2 %474 }
  0x72   : > { %v500_v54 = vmul.f32 %v1108_v49, %v475_v34 }
  0x79   : > { %v460_v40 = vpop.permute.xlu2 %459 }
  0x7a   : > { %v497_v5 = vmul.f32 %v1103_v1, %v460_v40  ;;  %v1082_v1 = vld [vmem:[%s1345_s15] sm:$0xff]  }
  0x80   : > { %v592_v36 = vpop.permute.xlu1 %591 }
  0x81   : > { %v480_v37 = vpop.permute.xlu0 %479  ;;  %v577_v57 = vpop.permute.xlu2 %576 }
  0x82   : > { %v501_v41 = vmul.f32 %v1111_v38, %v480_v37  ;;  %v1114_v37 = vld [vmem:[%s1345_s15 + $0x10] sm:$0xff]  }
  0x84   : > { %v613_v47 = vadd.f32 %v592_v36, %v501_v41 }
  0x86   : > { %v629_v52 = vmax.f32 %v613_v47, 0.0 }
  0x88   : > { %v597_v44 = vpop.permute.xlu1 %596 }
  0x89   : > { %v485_v46 = vpop.permute.xlu0 %484  ;;  %v562_v8 = vpop.permute.xlu2 %561 }
  0x8a   : > { %v502_v48 = vmul.f32 %v1112_v42, %v485_v46  ;;  %v1091_v42 = vunpack.c.l.bf16 %v1114_v37  ;;  %v1092_v46 = vunpack.c.h.bf16 %v1114_v37 }
  0x8c   : > { %v614_v51 = vadd.f32 %v597_v44, %v502_v48 }
  0x8e   : > { %v630_v53 = vmax.f32 %v614_v51, 0.0 }
  0x90   : > { %v587_v58 = vpop.permute.xlu1 %586  ;;  %v1049_v59 = vpack.c.bf16 %v630_v53, %v629_v52 }
  0x91   : > { %v612_v61 = vadd.f32 %v587_v58, %v500_v54  ;;  %v582_v62 = vpop.permute.xlu0 %581  ;;  %v445_v19 = vpop.permute.xlu2 %444  ;;  %v1113_v54 = vld [vmem:[%s1345_s15 + $0x8] sm:$0xff]  }
  0x92   : > { %v611_v63 = vadd.f32 %v582_v62, %v499_v56  ;;  %1050 = vmatpush.bf16.msk.msra.mxu0 %vm1355_vm1, %v1049_v59  ;;  %1120 = vmatpush.bf16.msk.msra.mxu1 %vm1355_vm1, %v1049_v59  ;;  %v494_v34 = vmul.f32 %v1096_v28, %v445_v19  ;;  %v1087_v59 = vunpack.c.l.bf16 %v1113_v54 }
  0x93   : > { %v628_v0 = vmax.f32 %v612_v61, 0.0 }
  0x94   : > { %v627_v2 = vmax.f32 %v611_v63, 0.0  ;;  %v1088_v63 = vunpack.c.h.bf16 %v1113_v54 }
  0x96   : > { %v1052_v3 = vpack.c.bf16 %v628_v0, %v627_v2 }
  0x98   : > { %1053 = vmatpush.bf16.msk.msra.mxu0 %vm1355_vm1, %v1052_v3  ;;  %1121 = vmatpush.bf16.msk.msra.mxu1 %vm1355_vm1, %v1052_v3  ;;  %v572_v6 = vpop.permute.xlu1 %571 }
  0x99   : > { %v465_v7 = vpop.permute.xlu0 %464  ;;  %v609_v9 = vadd.f32 %v572_v6, %v497_v5  ;;  %v430_v32 = vpop.permute.xlu2 %429 }
  0x9a   : > { %v498_v10 = vmul.f32 %v1104_v4, %v465_v7  ;;  %v491_v47 = vmul.f32 %v1091_v42, %v430_v32  ;;  %v1084_v7 = vunpack.c.h.bf16 %v1082_v1 }
  0x9b   : > { %v625_v13 = vmax.f32 %v609_v9, 0.0 }
  0x9c   : > { %v610_v11 = vadd.f32 %v577_v57, %v498_v10 }
  0x9e   : > { %v626_v14 = vmax.f32 %v610_v11, 0.0  ;;  %v1083_v11 = vunpack.c.l.bf16 %v1082_v1 }
  0xa0   : > { %v455_v15 = vpop.permute.xlu1 %454  ;;  %v1055_v17 = vpack.c.bf16 %v626_v14, %v625_v13 }
  0xa1   : > { %v450_v18 = vpop.permute.xlu0 %449  ;;  %v496_v23 = vmul.f32 %v1100_v20, %v455_v15  ;;  %v547_v48 = vpop.permute.xlu2 %546 }
  0xa2   : > { %1056 = vmatpush.bf16.msk.msra.mxu0 %vm1355_vm1, %v1055_v17  ;;  %1122 = vmatpush.bf16.msk.msra.mxu1 %vm1355_vm1, %v1055_v17  ;;  %v495_v21 = vmul.f32 %v1099_v16, %v450_v18 }
  0xa4   : > { %v607_v24 = vadd.f32 %v562_v8, %v495_v21 }
  0xa6   : > { %v623_v29 = vmax.f32 %v607_v24, 0.0 }
  0xa8   : > { %v440_v25 = vpop.permute.xlu1 %439 }
  0xa9   : > { %v567_v26 = vpop.permute.xlu0 %566  ;;  %v493_v35 = vmul.f32 %v1095_v31, %v440_v25  ;;  %v532_v62 = vpop.permute.xlu2 %531 }
  0xaa   : > { %v608_v27 = vadd.f32 %v567_v26, %v496_v23  ;;  %v1080_v23 = vld [vmem:[%s1460_s3 + $0x8] sm:$0xff] }
  0xac   : > { %v624_v30 = vmax.f32 %v608_v27, 0.0 }
  0xae   : > { %v1058_v33 = vpack.c.bf16 %v624_v30, %v623_v29 }
  0xb0   : > { %1059 = vmatpush.bf16.msk.msra.mxu0 %vm1355_vm1, %v1058_v33  ;;  %1123 = vmatpush.bf16.msk.msra.mxu1 %vm1355_vm1, %v1058_v33  ;;  %v557_v36 = vpop.permute.xlu1 %556 }
  0xb1   : > { %v552_v38 = vpop.permute.xlu0 %551  ;;  %v606_v39 = vadd.f32 %v557_v36, %v494_v34  ;;  %v415_v8 = vpop.permute.xlu2 %414 }
  0xb2   : > { %v605_v40 = vadd.f32 %v552_v38, %v493_v35  ;;  %v488_v13 = vmul.f32 %v1084_v7, %v415_v8 }
  0xb3   : > { %v622_v41 = vmax.f32 %v606_v39, 0.0 }
  0xb4   : > { %v621_v43 = vmax.f32 %v605_v40, 0.0 }
  0xb6   : > { %v1061_v44 = vpack.c.bf16 %v622_v41, %v621_v43 }
  0xb8   : > { %1062 = vmatpush.bf16.msk.msra.mxu0 %vm1355_vm1, %v1061_v44  ;;  %1124 = vmatpush.bf16.msk.msra.mxu1 %vm1355_vm1, %v1061_v44  ;;  %v542_v49 = vpop.permute.xlu1 %541 }
  0xb9   : > { %v435_v50 = vpop.permute.xlu0 %434  ;;  %v603_v51 = vadd.f32 %v542_v49, %v491_v47 }
  0xba   : > { %v492_v52 = vmul.f32 %v1092_v46, %v435_v50 }
  0xbb   : > { %v619_v56 = vmax.f32 %v603_v51, 0.0 }
  0xbc   : > { %v604_v53 = vadd.f32 %v547_v48, %v492_v52 }
  0xbe   : > { %v620_v57 = vmax.f32 %v604_v53, 0.0 }
  0xc0   : > { %v425_v58 = vpop.permute.xlu1 %424  ;;  %v1064_v60 = vpack.c.bf16 %v620_v57, %v619_v56 }
  0xc1   : > { %v420_v61 = vpop.permute.xlu0 %419  ;;  %v490_v2 = vmul.f32 %v1088_v63, %v425_v58 }
  0xc2   : > { %1065 = vmatpush.bf16.msk.msra.mxu0 %vm1355_vm1, %v1064_v60  ;;  %1125 = vmatpush.bf16.msk.msra.mxu1 %vm1355_vm1, %v1064_v60  ;;  %v489_v0 = vmul.f32 %v1087_v59, %v420_v61 }
  0xc4   : > { %v601_v3 = vadd.f32 %v532_v62, %v489_v0 }
  0xc6   : > { %v617_v9 = vmax.f32 %v601_v3, 0.0 }
  0xc8   : > { %v410_v4 = vpop.permute.xlu1 %409 }
  0xc9   : > { %v537_v5 = vpop.permute.xlu0 %536  ;;  %v487_v14 = vmul.f32 %v1083_v11, %v410_v4 }
  0xca   : > { %v602_v6 = vadd.f32 %v537_v5, %v490_v2 }
  0xcc   : > { %v618_v10 = vmax.f32 %v602_v6, 0.0 }
  0xce   : > { %v1067_v12 = vpack.c.bf16 %v618_v10, %v617_v9 }
  0xd0   : > { %1068 = vmatpush.bf16.msk.msra.mxu0 %vm1355_vm1, %v1067_v12  ;;  %1126 = vmatpush.bf16.msk.msra.mxu1 %vm1355_vm1, %v1067_v12  ;;  %v527_v15 = vpop.permute.xlu1 %526 }
  0xd1   : > { %v522_v16 = vpop.permute.xlu0 %521  ;;  %v600_v17 = vadd.f32 %v527_v15, %v488_v13 }
  0xd2   : > { %v599_v18 = vadd.f32 %v522_v16, %v487_v14 }
  0xd3   : > { %v616_v19 = vmax.f32 %v600_v17, 0.0 }
  0xd4   : > { %v615_v20 = vmax.f32 %v599_v18, 0.0 }
  0xd6   : > { %v1070_v21 = vpack.c.bf16 %v616_v19, %v615_v20 }
  0xd8   : > { %1071 = vmatpush.bf16.msk.msra.mxu0 %vm1355_vm1, %v1070_v21  ;;  %1127 = vmatpush.bf16.msk.msra.mxu1 %vm1355_vm1, %v1070_v21 }
  0xdb   : > { %687 = vmatmul.bf16.vlgmr.msra.gmra.mxu0 %v1079_v22  ;;  %692 = vmatmul.bf16.vlgmr.msra.gmra.mxu1 %v1080_v23 }
 0x158   : > { %v688_v24 = vpop.f32.mrf.mxu0  ;;  %v693_v25 = vpop.f32.mrf.mxu1 }
 0x159   : > { %800 = vadd.xlane.f32.xlu1 %v693_v25  ;;  %796 = vadd.xlane.f32.xlu2 %v688_v24  ;;  %v737_v26 = vsel %vm636_vm0, %v688_v24, -inf  ;;  %v739_v27 = vsel %vm636_vm0, %v693_v25, -inf  ;;  %v745_v29 = vsel %vm636_vm0, %v688_v24, inf  ;;  %v712_v30 = vmul.f32 %v693_v25, %v693_v25 }
 0x15a   : > { %829 = vmax.xlane.f32.xlu0 %v737_v26  ;;  %v710_v31 = vmul.f32 %v688_v24, %v688_v24  ;;  %v747_v37 = vsel %vm636_vm0, %v693_v25, inf }
 0x160   : > { %v690_v28 = vpop.f32.mrf.mxu0  ;;  %v695_v55 = vpop.f32.mrf.mxu1 }
 0x161   : > { %833 = vmax.xlane.f32.xlu2 %v739_v27  ;;  %845 = vmin.xlane.f32.xlu1 %v745_v29  ;;  %v740_v32 = vsel %vm636_vm0, %v695_v55, -inf  ;;  %v738_v33 = vsel %vm636_vm0, %v690_v28, -inf  ;;  %v711_v34 = vmul.f32 %v690_v28, %v690_v28  ;;  %v713_v35 = vmul.f32 %v695_v55, %v695_v55 }
 0x162   : > { %798 = vadd.xlane.f32.xlu0 %v690_v28  ;;  %v748_v36 = vsel %vm636_vm0, %v695_v55, inf  ;;  %v746_v38 = vsel %vm636_vm0, %v690_v28, inf }
 0x169   : > { %817 = vadd.xlane.f32.xlu1 %v712_v30  ;;  %813 = vadd.xlane.f32.xlu2 %v710_v31 }
 0x16a   : > { %835 = vmax.xlane.f32.xlu0 %v740_v32 }
 0x171   : > { %802 = vadd.xlane.f32.xlu2 %v695_v55  ;;  %831 = vmax.xlane.f32.xlu1 %v738_v33 }
 0x172   : > { %815 = vadd.xlane.f32.xlu0 %v711_v34 }
 0x179   : > { %819 = vadd.xlane.f32.xlu2 %v713_v35  ;;  %851 = vmin.xlane.f32.xlu1 %v748_v36 }
 0x17a   : > { %849 = vmin.xlane.f32.xlu0 %v747_v37 }
 0x181   : > { %847 = vmin.xlane.f32.xlu2 %v746_v38 }
 0x1cc   : > { %v801_v39 = vpop.xlane.xlu1 %800  ;;  %v797_v40 = vpop.xlane.xlu2 %796 }
 0x1cd   : > { %807 = vst.msk [vmem:[%s323_s23 + $0x10] sm:$0xff] %vm804_vm2, %v801_v39  ;;  %v830_v41 = vpop.xlane.xlu0 %829 }
 0x1ce   : > { %805 = vst.msk [vmem:[%s323_s23] sm:$0xff] %vm804_vm2, %v797_v40 }
 0x1cf   : > { %837 = vst.msk [vmem:[%s333_s30] sm:$0xff] %vm804_vm2, %v830_v41 }
 0x1d4   : > { %v834_v45 = vpop.xlane.xlu2 %833  ;;  %v846_v42 = vpop.xlane.xlu1 %845 }
 0x1d5   : > { %839 = vst.msk [vmem:[%s333_s30 + $0x10] sm:$0xff] %vm804_vm2, %v834_v45  ;;  %v799_v43 = vpop.xlane.xlu0 %798 }
 0x1d6   : > { %853 = vst.msk [vmem:[%s338_s9] sm:$0xff] %vm804_vm2, %v846_v42 }
 0x1d7   : > { %806 = vst.msk [vmem:[%s323_s23 + $0x8] sm:$0xff] %vm804_vm2, %v799_v43 }
 0x1dc   : > { %v818_v44 = vpop.xlane.xlu1 %817  ;;  %v814_v46 = vpop.xlane.xlu2 %813 }
 0x1dd   : > { %823 = vst.msk [vmem:[%s328_s12 + $0x10] sm:$0xff] %vm804_vm2, %v818_v44  ;;  %v836_v47 = vpop.xlane.xlu0 %835 }
 0x1de   : > { %821 = vst.msk [vmem:[%s328_s12] sm:$0xff] %vm804_vm2, %v814_v46 }
 0x1df   : > { %840 = vst.msk [vmem:[%s333_s30 + $0x18] sm:$0xff] %vm804_vm2, %v836_v47 }
 0x1e4   : > { %v803_v48 = vpop.xlane.xlu2 %802  ;;  %v832_v49 = vpop.xlane.xlu1 %831 }
 0x1e5   : > { %808 = vst.msk [vmem:[%s323_s23 + $0x18] sm:$0xff] %vm804_vm2, %v803_v48  ;;  %v816_v50 = vpop.xlane.xlu0 %815 }
 0x1e6   : > { %838 = vst.msk [vmem:[%s333_s30 + $0x8] sm:$0xff] %vm804_vm2, %v832_v49 }
 0x1e7   : > { %822 = vst.msk [vmem:[%s328_s12 + $0x8] sm:$0xff] %vm804_vm2, %v816_v50 }
 0x1ec   : > { %v820_v51 = vpop.xlane.xlu2 %819  ;;  %v852_v52 = vpop.xlane.xlu1 %851 }
 0x1ed   : > { %824 = vst.msk [vmem:[%s328_s12 + $0x18] sm:$0xff] %vm804_vm2, %v820_v51  ;;  %v850_v53 = vpop.xlane.xlu0 %849 }
 0x1ee   : > { %856 = vst.msk [vmem:[%s338_s9 + $0x18] sm:$0xff] %vm804_vm2, %v852_v52 }
 0x1ef   : > { %855 = vst.msk [vmem:[%s338_s9 + $0x10] sm:$0xff] %vm804_vm2, %v850_v53 }
 0x1f4   : > { %v848_v54 = vpop.xlane.xlu2 %847 }
 0x1f5   : > { %854 = vst.msk [vmem:[%s338_s9 + $0x8] sm:$0xff] %vm804_vm2, %v848_v54 }
 0x1f6 PF: > { %s18_s26 = sadd.s32 1, %s1178_s26   ;;  %s1467_s24 = smov %s1174_s25 }
 0x1f7   : > { %p15_p5 = scmp.ge.s32.totalorder %s18_s26, 4   ;;  %s1468_s25 = smov %s1470_s27 }
 0x1f9   :  { %17 = sbr.rel (!%p15_p5) target bundleno = 2 (0x2), region = 118 }

// kernel: pointnet_forward.7
= control target key start
LH: loop header
LB: loop body
LE: loop exit
PB: predicated region body
PF: predicated region fallthrough
CT: control target
= control target key end

     0   :  { %s359_s0 = inlined_call_operand.vmem [shape: f32[2,32], index: 0, kind: input, shape index: {}]   ;;  %s360_s1 = inlined_call_operand.vmem [shape: f32[32,32], index: 1, kind: input, shape index: {}]   ;;  %s361_s2 = inlined_call_operand.vmem [shape: f32[1,32], index: 2, kind: input, shape index: {}]   ;;  %s362_s3 = inlined_call_operand.vmem [shape: f32[1,32], index: 3, kind: input, shape index: {}]   ;;  %s363_s4 = inlined_call_operand.vmem [shape: f32[1,32], index: 4, kind: input, shape index: {}]   ;;  %s364_s5 = inlined_call_operand.vmem [shape: f32[32,32], index: 5, kind: input, shape index: {}]   ;;  %s365_s6 = inlined_call_operand.vmem [shape: f32[1,32], index: 6, kind: input, shape index: {}]   ;;  %s366_s7 = inlined_call_operand.vmem [shape: f32[1,32], index: 7, kind: input, shape index: {}]   ;;  %s367_s8 = inlined_call_operand.vmem [shape: f32[1,32], index: 8, kind: input, shape index: {}]   ;;  %s368_s9 = inlined_call_operand.hbm [shape: f32[2,32], index: 9, kind: output, shape index: {}]  }
   0x1   :  { %v37_v0 = vld [vmem:[%s360_s1 + $0x18] sm:$0xff]  ;;  %v36_v1 = vld [vmem:[%s360_s1 + $0x10] sm:$0xff]  ;;  %v35_v2 = vld [vmem:[%s360_s1 + $0x8] sm:$0xff] }
   0x2   :  { %60 = vmatpush.msra.mxu0 %v37_v0 }
   0x4   :  { %61 = vmatpush.msra.mxu0 %v36_v1 }
   0x5   :  { %14 = vsyncpa [#allocation3], 0  ;;  %v34_v3 = vld [vmem:[%s360_s1] sm:$0xff]  ;;  %vm44_vm0 = vcmask 261120   ;;  %v252_v5 = vmov 2.0   ;;  %vm68_vm1 = vcmask 254976  }
   0x6   :  { %62 = vmatpush.msra.mxu0 %v35_v2  ;;  %v33_v4 = vld [vmem:[%s359_s0] sm:$0x3]  ;;  %220 = vrcp.f32 %v252_v5  ;;  %v121_v26 = vld [vmem:[%s364_s5 + $0x18] sm:$0xff]  ;;  %v120_v27 = vld [vmem:[%s364_s5 + $0x10] sm:$0xff]  ;;  %s253_s11 = smov [#allocation2]   ;;  %s201_s15 = sshll.u32 %s368_s9, 4  ;;  %s202_s15 = int_to_ptr.hbm [resolvable:$true] %s201_s15 }
   0x7   :  { %v214_v7 = vld [vmem:[%s361_s2] ss:$0 sm:$0xff]  ;;  %143 = vmatpush.msra.mxu1 %v121_v26  ;;  %v119_v31 = vld [vmem:[%s364_s5 + $0x8] sm:$0xff]  ;;  %s199_s12 = sshll.u32 %s253_s11, 4  ;;  %s200_s12 = int_to_ptr.vmem [resolvable:$true] %s199_s12 }
   0x8   :  { %63 = vmatpush.msra.mxu0 %v34_v3  ;;  %v118_v34 = vld [vmem:[%s364_s5] sm:$0xff] }
   0x9   :  { %210 = vmatmul.msk.f32.vlgmr.msra.gmra.mxu0 %vm44_vm0, %v33_v4  ;;  %144 = vmatpush.msra.mxu1 %v120_v27  ;;  %v215_v47 = vld [vmem:[%s362_s3] ss:$0 sm:$0xff] }
   0xa   :  { %v216_v50 = vld [vmem:[%s363_s4] ss:$0 sm:$0xff] }
   0xb   :  { %145 = vmatpush.msra.mxu1 %v119_v31  ;;  %v217_v54 = vld [vmem:[%s365_s6] ss:$0 sm:$0xff] }
   0xc   :  { %v221_v6 = vpop.eup %220 }
   0xd   :  { %v77_v8 = vmul.f32 2.0, %v221_v6  ;;  %vm81_vm2 = vweird.f32 %v221_v6  ;;  %146 = vmatpush.msra.mxu1 %v118_v34 }
   0xf   :  { %v78_v11 = vsub.f32 1.0, %v77_v8 }
  0x11   :  { %v79_v15 = vmul.f32 %v221_v6, %v78_v11 }
  0x13   :  { %v80_v21 = vadd.f32 %v221_v6, %v79_v15 }
  0x15   :  { %v82_v28 = vsel %vm81_vm2, %v221_v6, %v80_v21  ;;  %v218_v21 = vld [vmem:[%s366_s7] ss:$0 sm:$0xff] }
  0x86   :  { %v65_v9 = vpop.f32.mrf.mxu0 }
  0x87   :  { %v66_v10 = vadd.f32 %v214_v7, %v65_v9 }
  0x89   :  { %v69_v12 = vsel %vm68_vm1, %v66_v10, 0.0  ;;  %v84_v13 = vmul.f32 %v66_v10, %v66_v10 }
  0x8a   :  { %v70_v14 = vrot.slane %v69_v12, 4 }
  0x8b   :  { %v85_v16 = vsel %vm68_vm1, %v84_v13, 0.0 }
  0x8c   :  { %v71_v17 = vadd.f32 %v70_v14, %v69_v12  ;;  %v86_v18 = vrot.slane %v85_v16, 4 }
  0x8e   :  { %v72_v19 = vrot.slane %v71_v17, 2  ;;  %v87_v20 = vadd.f32 %v86_v18, %v85_v16 }
  0x90   :  { %v73_v22 = vadd.f32 %v72_v19, %v71_v17  ;;  %v88_v23 = vrot.slane %v87_v20, 2 }
  0x92   :  { %v74_v24 = vrot.slane %v73_v22, 1  ;;  %v89_v25 = vadd.f32 %v88_v23, %v87_v20 }
  0x94   :  { %v75_v29 = vadd.f32 %v74_v24, %v73_v22  ;;  %v90_v30 = vrot.slane %v89_v25, 1  ;;  %v219_v24 = vld [vmem:[%s367_s8] ss:$0 sm:$0xff] }
  0x96   :  { %v83_v32 = vmul.f32 %v82_v28, %v75_v29  ;;  %v91_v33 = vadd.f32 %v90_v30, %v89_v25 }
  0x98   :  { %v92_v35 = vmul.f32 %v91_v33, %v82_v28  ;;  %v93_v36 = vmul.f32 %v83_v32, %v83_v32  ;;  %v96_v46 = vsub.f32 %v66_v10, %v83_v32 }
  0x9a   :  { %v94_v37 = vsub.f32 %v92_v35, %v93_v36 }
  0x9c   :  { %v95_v38 = vmax.f32 %v94_v37, 0.0 }
  0x9e   :  { %v97_v39 = vadd.f32 1e-05, %v95_v38 }
  0xa0   :  { %222 = vrsqrt.f32 %v97_v39  ;;  %vm104_vm4 = vweird.f32 %v97_v39 }
  0xa6   :  { %v223_v40 = vpop.eup %222 }
  0xa7   :  { %v99_v41 = vmul.f32 %v223_v40, %v97_v39  ;;  %vm105_vm3 = vweird.f32 %v223_v40 }
  0xa8   :  { %vm106_vm5 = vmor %vm104_vm4, %vm105_vm3 }
  0xa9   :  { %v100_v42 = vmul.f32 %v223_v40, %v99_v41 }
  0xab   :  { %v101_v43 = vmul.f32 0.5, %v100_v42 }
  0xad   :  { %v102_v44 = vsub.f32 1.5, %v101_v43 }
  0xaf   :  { %v103_v45 = vmul.f32 %v223_v40, %v102_v44 }
  0xb1   :  { %v107_v48 = vsel %vm106_vm5, %v223_v40, %v103_v45 }
  0xb2   :  { %v108_v49 = vmul.f32 %v107_v48, %v96_v46 }
  0xb4   :  { %v112_v51 = vmul.f32 %v215_v47, %v108_v49 }
  0xb6   :  { %v116_v52 = vadd.f32 %v216_v50, %v112_v51 }
  0xb8   :  { %v117_v53 = vmax.f32 %v116_v52, 0.0 }
  0xba   :  { %211 = vmatmul.msk.f32.vlgmr.msra.gmra.mxu1 %vm44_vm0, %v117_v53 }
 0x137   :  { %v148_v55 = vpop.f32.mrf.mxu1 }
 0x138   :  { %v149_v56 = vadd.f32 %v217_v54, %v148_v55 }
 0x13a   :  { %v151_v57 = vsel %vm68_vm1, %v149_v56, 0.0  ;;  %v159_v58 = vmul.f32 %v149_v56, %v149_v56 }
 0x13b   :  { %v152_v59 = vrot.slane %v151_v57, 4 }
 0x13c   :  { %v160_v60 = vsel %vm68_vm1, %v159_v58, 0.0 }
 0x13d   :  { %v153_v61 = vadd.f32 %v152_v59, %v151_v57  ;;  %v161_v62 = vrot.slane %v160_v60, 4 }
 0x13f   :  { %v154_v63 = vrot.slane %v153_v61, 2  ;;  %v162_v0 = vadd.f32 %v161_v62, %v160_v60 }
 0x141   :  { %v155_v1 = vadd.f32 %v154_v63, %v153_v61  ;;  %v163_v2 = vrot.slane %v162_v0, 2 }
 0x143   :  { %v156_v3 = vrot.slane %v155_v1, 1  ;;  %v164_v4 = vadd.f32 %v163_v2, %v162_v0 }
 0x145   :  { %v157_v5 = vadd.f32 %v156_v3, %v155_v1  ;;  %v165_v6 = vrot.slane %v164_v4, 1 }
 0x147   :  { %v158_v7 = vmul.f32 %v157_v5, %v82_v28  ;;  %v166_v8 = vadd.f32 %v165_v6, %v164_v4 }
 0x149   :  { %v167_v9 = vmul.f32 %v166_v8, %v82_v28  ;;  %v168_v10 = vmul.f32 %v158_v7, %v158_v7  ;;  %v171_v20 = vsub.f32 %v149_v56, %v158_v7 }
 0x14b   :  { %v169_v11 = vsub.f32 %v167_v9, %v168_v10 }
 0x14d   :  { %v170_v12 = vmax.f32 %v169_v11, 0.0 }
 0x14f   :  { %v172_v13 = vadd.f32 1e-05, %v170_v12 }
 0x151   :  { %224 = vrsqrt.f32 %v172_v13  ;;  %vm179_vm7 = vweird.f32 %v172_v13 }
 0x157   :  { %v225_v14 = vpop.eup %224 }
 0x158   :  { %v174_v15 = vmul.f32 %v225_v14, %v172_v13  ;;  %vm180_vm6 = vweird.f32 %v225_v14 }
 0x159   :  { %vm181_vm8 = vmor %vm179_vm7, %vm180_vm6 }
 0x15a   :  { %v175_v16 = vmul.f32 %v225_v14, %v174_v15 }
 0x15c   :  { %v176_v17 = vmul.f32 0.5, %v175_v16 }
 0x15e   :  { %v177_v18 = vsub.f32 1.5, %v176_v17 }
 0x160   :  { %v178_v19 = vmul.f32 %v225_v14, %v177_v18 }
 0x162   :  { %v182_v22 = vsel %vm181_vm8, %v225_v14, %v178_v19 }
 0x163   :  { %v183_v23 = vmul.f32 %v182_v22, %v171_v20 }
 0x165   :  { %v187_v25 = vmul.f32 %v218_v21, %v183_v23 }
 0x167   :  { %v191_v26 = vadd.f32 %v219_v24, %v187_v25 }
 0x169   :  { %v192_v27 = vmax.f32 %v191_v26, 0.0 }
 0x16b   :  { %193 = vst.msk [vmem:[#allocation2] sm:$0x3] %vm68_vm1, %v192_v27 }
 0x16c   :  { %204 = dma.vmem_to_hbm [thread:$0]  %s200_s12, 32, %s202_s15, [#allocation3]  }
 0x16d   :  { %250 = dma.done.wait [#allocation3], 32  }
 0x16e   :  { %251 = vsyncadd [#allocation3], 4294967264 }
 0x16f   :  { %209 = vsyncpa [#allocation3], 1 }

</bundles_post_ra>
